<compile_context>
chip_gen: v5e
topology: v5e:2x2
jax: 0.10.0
libtpu: 0.0.40
codegen_flags: <defaults>
</compile_context>

<pallas_src>
import functools

import jax
import jax.numpy as jnp
from jax.experimental import pallas as pl
from jax.experimental.pallas import tpu as pltpu


# =============================================================================
# Small helpers
# =============================================================================
def _round_up(x, m):
    return ((x + m - 1) // m) * m


def _vmem_capacity_bytes():
    try:
        info = pltpu.get_tpu_info()
        cap = int(getattr(info, "vmem_capacity_bytes", 0) or 0)
        if cap > 0:
            return cap
    except Exception:
        pass
    return 128 << 20


def _largest_divisor_leq(n, limit):
    limit = max(1, min(n, int(limit)))
    best, d = 1, 1
    while d * d <= n:
        if n % d == 0:
            q = n // d
            if d <= limit:
                best = max(best, d)
            if q <= limit:
                best = max(best, q)
        d += 1
    return best


def _smallest_divisor_geq(n, lo):
    for d in range(max(1, lo), n + 1):
        if n % d == 0:
            return d
    return n


# =============================================================================
# Conv2d (stride 1, SAME) kernel with fused GN+SiLU prologue, bias+skip
# epilogue, valid-only stores and optional [sum, sumsq] stats output.
# =============================================================================
def _make_conv_kernel(*, offsets, Mt, th, W, Wp, H, ph, pw, Cin, Cout,
                      use_halo, has_gn, has_skip, emit_stats, cdt):
    def kernel(*refs):
        refs = list(refs)
        x_ref = refs.pop(0)
        h_ref = refs.pop(0) if use_halo else None
        w_ref = refs.pop(0)
        b_ref = refs.pop(0)
        ga_ref = refs.pop(0) if has_gn else None
        gb_ref = refs.pop(0) if has_gn else None
        s_ref = refs.pop(0) if has_skip else None
        o_ref = refs.pop(0)
        st_ref = refs.pop(0) if emit_stats else None

        t = pl.program_id(1)

        x = x_ref[...]
        if use_halo:
            x = jnp.concatenate([x, h_ref[...]], axis=0)     # (L, Cin)

        if has_gn:
            # GroupNorm affine (precomputed per-channel a,b) + SiLU, in f32.
            xf = x.astype(jnp.float32)
            a = ga_ref[...].astype(jnp.float32)               # (1, Cin)
            bsh = gb_ref[...].astype(jnp.float32)             # (1, Cin)
            y = xf * a + bsh
            y = y * jax.nn.sigmoid(y)
            # Re-zero SAME-padding / alignment positions (they must stay zero
            # AFTER GN+SiLU so the conv sees proper zero padding).
            rows = y.shape[0] // Wp
            y3 = y.reshape(rows, Wp, Cin)
            r3 = jax.lax.broadcasted_iota(jnp.int32, (rows, Wp, 1), 0) + t * th
            c3 = jax.lax.broadcasted_iota(jnp.int32, (rows, Wp, 1), 1)
            valid = ((r3 >= ph) & (r3 < ph + H) & (c3 >= pw) & (c3 < pw + W))
            x = jnp.where(valid, y3, 0.0).reshape(rows * Wp, Cin)

        xc = x.astype(cdt)

        acc = jnp.zeros((Mt, Cout), jnp.float32)
        for k, off in enumerate(offsets):
            acc = acc + jnp.dot(xc[off:off + Mt, :], w_ref[k],
                                preferred_element_type=jnp.float32)

        acc = acc + b_ref[...].astype(jnp.float32)
        out3 = acc.reshape(th, Wp, Cout)[:, :W, :]            # drop garbage cols
        if has_skip:
            out3 = out3 + s_ref[...].astype(jnp.float32)
        o_ref[...] = out3.astype(o_ref.dtype)

        if emit_stats:
            @pl.when(t == 0)
            def _():
                st_ref[...] = jnp.zeros_like(st_ref)
            s1 = jnp.sum(out3, axis=(0, 1))[None, :]
            s2 = jnp.sum(out3 * out3, axis=(0, 1))[None, :]
            st_ref[...] += jnp.concatenate([s1, s2], axis=0)

    return kernel


def conv2d_pallas(x, w, b, skip=None, gn=None, *, emit_stats=False,
                  compute_dtype=None, tile_rows=None):
    """NHWC conv, stride 1, SAME padding.

    Optional fusions:
      gn=(a, b): per-channel affine (N,1,Cin) applied as silu(x*a+b) on the
                 input (GroupNorm+SiLU prologue, padding re-zeroed in-kernel).
      skip:      residual added to the output (f32 epilogue).
      emit_stats: also return (N, 2, Cout) f32 [sum, sumsq] of the output.
    """
    N, H, W, Cin = x.shape
    kh, kw, _, Cout = w.shape
    ph, pw = kh // 2, kw // 2
    K = kh * kw
    cdt = jnp.dtype(compute_dtype) if compute_dtype is not None else jnp.dtype(x.dtype)
    in_dt = x.dtype
    in_isz = jnp.dtype(in_dt).itemsize
    w_isz = cdt.itemsize
    out_isz = cdt.itemsize
    use_halo = (ph > 0) or (pw > 0)
    has_gn = gn is not None
    has_skip = skip is not None

    Wp = _round_up(W + 2 * pw, 8)          # sublane-aligned row pitch
    cap = _vmem_capacity_bytes()

    # -- choose the row tile (th must divide H so every output block is valid)
    if tile_rows is not None:
        th = max(1, min(H, int(tile_rows)))
        if H % th != 0:
            th = _largest_divisor_leq(H, th)
    else:
        row_in = Wp * Cin * (2 * in_isz + 8 + 2 * w_isz)
        skip_isz = jnp.dtype(skip.dtype).itemsize if has_skip else 0
        row_out = W * Cout * (2 * out_isz + 2 * skip_isz + 8)
        fixed = 2 * K * Cin * Cout * w_isz + (2 << 20)
        budget = min(cap // 3, 48 << 20)
        th = _largest_divisor_leq(H, max(1, (budget - fixed) // max(1, row_in + row_out)))

    if use_halo:
        need = 2 * ph + (1 if pw > 0 else 0)
        if th < need:
            th = _smallest_divisor_geq(H, min(need, H))
        if th % 8 == 0:
            Hb = 8
        elif th % 4 == 0 and 4 >= need:
            Hb = 4
        else:
            Hb = th
        assert Hb * Wp >= 2 * ph * Wp + 2 * pw, "tile too small for conv halo"
    else:
        Hb = 0

    n_t = H // th
    Mt = th * Wp
    offsets = tuple(dy * Wp + dx for dy in range(kh) for dx in range(kw))

    # -- padded, flattened input (single cheap pad; no per-tile HBM copies)
    bp = Hb if use_halo else 0
    pad_r = Wp - W - pw
    if ph or pw or bp or pad_r:
        xp = jnp.pad(x, ((0, 0), (ph, bp), (pw, pad_r), (0, 0)))
    else:
        xp = x
    P = ph + H + bp
    xf = xp.reshape(N, P * Wp, Cin)

    # -- operands / specs
    args = [xf]
    in_specs = [pl.BlockSpec((None, Mt, Cin), lambda n, t: (n, t, 0))]
    if use_halo:
        hb_step = th // Hb
        args.append(xf)  # same array, tiny halo window of the next tile rows
        in_specs.append(pl.BlockSpec((None, Hb * Wp, Cin),
                                     lambda n, t: (n, (t + 1) * hb_step, 0)))
    args.append(w.reshape(K, Cin, Cout).astype(cdt))
    in_specs.append(pl.BlockSpec((K, Cin, Cout), lambda n, t: (0, 0, 0)))
    args.append(b.reshape(1, Cout).astype(jnp.float32))
    in_specs.append(pl.BlockSpec((1, Cout), lambda n, t: (0, 0)))
    if has_gn:
        ga, gb = gn
        args += [ga.astype(jnp.float32), gb.astype(jnp.float32)]
        in_specs += [pl.BlockSpec((None, 1, Cin), lambda n, t: (n, 0, 0)),
                     pl.BlockSpec((None, 1, Cin), lambda n, t: (n, 0, 0))]
    if has_skip:
        args.append(skip)
        in_specs.append(pl.BlockSpec((None, th, W, Cout),
                                     lambda n, t: (n, t, 0, 0)))

    out_shapes = [jax.ShapeDtypeStruct((N, H, W, Cout), cdt)]
    out_specs = [pl.BlockSpec((None, th, W, Cout), lambda n, t: (n, t, 0, 0))]
    if emit_stats:
        out_shapes.append(jax.ShapeDtypeStruct((N, 2, Cout), jnp.float32))
        out_specs.append(pl.BlockSpec((None, 2, Cout), lambda n, t: (n, 0, 0)))

    # -- device-aware VMEM budget (generous: blocks x2 + f32 temporaries)
    L = Mt + (Hb * Wp if use_halo else 0)
    skip_bytes = (th * W * Cout * jnp.dtype(skip.dtype).itemsize) if has_skip else 0
    est = (2 * (Mt * Cin * in_isz
                + (Hb * Wp * Cin * in_isz if use_halo else 0)
                + K * Cin * Cout * w_isz
                + th * W * Cout * out_isz
                + skip_bytes
                + (2 * Cout * 4 if emit_stats else 0)
                + Cout * 4 + 2 * Cin * 4)
           + L * Cin * (8 + 3 * w_isz) + Mt * Cout * 8 + (2 << 20))
    vmem_limit = int(min(int(cap * 0.9), max(2 * est, 32 << 20)))

    kernel = _make_conv_kernel(
        offsets=offsets, Mt=Mt, th=th, W=W, Wp=Wp, H=H, ph=ph, pw=pw,
        Cin=Cin, Cout=Cout, use_halo=use_halo, has_gn=has_gn,
        has_skip=has_skip, emit_stats=emit_stats, cdt=cdt)

    outs = pl.pallas_call(
        kernel,
        grid=(N, n_t),
        in_specs=in_specs,
        out_specs=tuple(out_specs),
        out_shape=tuple(out_shapes),
        compiler_params=pltpu.CompilerParams(
            dimension_semantics=("parallel", "arbitrary"),
            vmem_limit_bytes=vmem_limit),
    )(*args)

    if emit_stats:
        return outs[0], outs[1]
    return outs[0], None


# =============================================================================
# GroupNorm affine precompute (tiny, runs as plain XLA on (N,2,C) sums)
# =============================================================================
def _gn_affine_from_stats(stats, gamma, beta, hw, groups, eps=1e-5):
    """stats: (N,2,C) f32 sums of the tensor being normalized (spatial size hw)."""
    N, _, C = stats.shape
    cg = C // groups
    g = stats.astype(jnp.float32).reshape(N, 2, groups, cg).sum(-1)   # (N,2,G)
    cnt = float(hw * cg)
    mean = g[:, 0] / cnt
    var = jnp.maximum(g[:, 1] / cnt - mean * mean, 0.0)
    rstd = jax.lax.rsqrt(var + eps)
    mean_c = jnp.repeat(mean, cg, axis=-1)                            # (N,C)
    rstd_c = jnp.repeat(rstd, cg, axis=-1)
    a = rstd_c * gamma[None, :].astype(jnp.float32)
    b = beta[None, :].astype(jnp.float32) - mean_c * a
    return a[:, None, :], b[:, None, :]                               # (N,1,C)


# =============================================================================
# Pure-JAX references (correctness checks only)
# =============================================================================
def conv2d_ref(x, w, b, skip=None):
    y = jax.lax.conv_general_dilated(
        x, w, window_strides=(1, 1), padding="SAME",
        dimension_numbers=("NHWC", "HWIO", "NHWC"),
        precision=jax.lax.Precision.HIGHEST) + b
    return y if skip is None else y + skip


def gn_silu_ref(x, gamma, beta, groups):
    N, H, W, C = x.shape
    cg = C // groups
    xg = x.reshape(N, H * W, groups, cg).astype(jnp.float32)
    mean = xg.mean(axis=(1, 3), keepdims=True)
    var = xg.var(axis=(1, 3), keepdims=True)
    y = ((xg - mean) / jnp.sqrt(var + 1e-5)).reshape(N, H, W, C)
    y = y * gamma + beta
    return (y * jax.nn.sigmoid(y)).astype(x.dtype)


# =============================================================================
# Parameter init (deterministic, mirrors the PyTorch __init__ structure)
# =============================================================================
def _make_conv(key, kh, kw, cin, cout):
    kw_, kb_ = jax.random.split(key)
    return {"w": jax.random.normal(kw_, (kh, kw, cin, cout), jnp.float32) * 0.05,
            "b": jax.random.normal(kb_, (cout,), jnp.float32) * 0.01}


def _make_gn(c):
    return {"gamma": jnp.ones((c,), jnp.float32),
            "beta": jnp.zeros((c,), jnp.float32)}


def _make_res(key, cin, cout):
    k1, k2, k3 = jax.random.split(key, 3)
    p = {"gn1": _make_gn(cin), "conv1": _make_conv(k1, 3, 3, cin, cout),
         "gn2": _make_gn(cout), "conv2": _make_conv(k2, 3, 3, cout, cout)}
    if cin != cout:
        p["shortcut"] = _make_conv(k3, 1, 1, cin, cout)
    return p


def init_decoder(key, out_channels, z_channels, base_channels,
                 n_layer_blocks, channel_multipliers):
    levels = len(channel_multipliers)
    channels_list = [base_channels * m for m in channel_multipliers]
    channels = channels_list[-1]
    keys = iter(jax.random.split(key, 128))
    params = {"decoder_input": _make_conv(next(keys), 3, 3, z_channels, channels)}
    params["mid"] = [_make_res(next(keys), channels, channels) for _ in range(3)]
    decoder = [None] * levels
    for i in reversed(range(levels)):
        blocks = []
        for _ in range(n_layer_blocks + 1):
            blocks.append(_make_res(next(keys), channels, channels_list[i]))
            channels = channels_list[i]
        up = {"blocks": blocks}
        if i != 0:
            up["upsample"] = _make_conv(next(keys), 3, 3, channels, channels)
        decoder[i] = up
    params["decoder"] = decoder
    params["out_gn"] = _make_gn(channels)
    params["out_conv"] = _make_conv(next(keys), 3, 3, channels, out_channels)
    return params


# =============================================================================
# Fused Pallas forward (GN+SiLU fused into the consuming conv; every conv that
# feeds a GroupNorm also emits the [sum, sumsq] stats its consumer needs).
# =============================================================================
def _conv_block(x, stats, gn_p, conv_p, *, skip=None, emit_stats=True,
                cdt, groups=32):
    gn = None
    if gn_p is not None:
        assert stats is not None
        N, H, W, C = x.shape
        gn = _gn_affine_from_stats(stats, gn_p["gamma"], gn_p["beta"],
                                   H * W, groups)
    return conv2d_pallas(x, conv_p["w"], conv_p["b"], skip=skip, gn=gn,
                         emit_stats=emit_stats, compute_dtype=cdt)


def _resblock_pallas(p, x, xs, cdt):
    h, hs = _conv_block(x, xs, p["gn1"], p["conv1"], cdt=cdt)
    if "shortcut" in p:
        skip, _ = _conv_block(x, None, None, p["shortcut"],
                              emit_stats=False, cdt=cdt)
    else:
        skip = x
    # dropout(drop_rate=0.0) == identity
    return _conv_block(h, hs, p["gn2"], p["conv2"], skip=skip, cdt=cdt)


def decoder_forward_pallas(params, z_nchw, *, compute_dtype=jnp.float32):
    cdt = compute_dtype
    x = jnp.transpose(z_nchw, (0, 2, 3, 1))                 # NCHW -> NHWC
    x, xs = _conv_block(x, None, None, params["decoder_input"], cdt=cdt)
    for p in params["mid"]:
        x, xs = _resblock_pallas(p, x, xs, cdt)
    for dec in reversed(params["decoder"]):
        for bp in dec["blocks"]:
            x, xs = _resblock_pallas(bp, x, xs, cdt)
        if "upsample" in dec:
            # TODO(synk): fold the nearest-x2 into the next conv's slab gather.
            x = jnp.repeat(jnp.repeat(x, 2, axis=1), 2, axis=2)
            x, xs = _conv_block(x, None, None, dec["upsample"], cdt=cdt)
    y, _ = _conv_block(x, xs, params["out_gn"], params["out_conv"],
                       emit_stats=False, cdt=cdt)
    return jnp.transpose(y.astype(z_nchw.dtype), (0, 3, 1, 2))  # NHWC -> NCHW


# -- reference forward (unfused, HIGHEST precision) ---------------------------
def _ref_resblock(p, x):
    h = gn_silu_ref(x, p["gn1"]["gamma"], p["gn1"]["beta"], 32)
    h = conv2d_ref(h, p["conv1"]["w"], p["conv1"]["b"])
    h = gn_silu_ref(h, p["gn2"]["gamma"], p["gn2"]["beta"], 32)
    skip = (conv2d_ref(x, p["shortcut"]["w"], p["shortcut"]["b"])
            if "shortcut" in p else x)
    return conv2d_ref(h, p["conv2"]["w"], p["conv2"]["b"], skip=skip)


def decoder_forward_ref(params, z_nchw):
    x = jnp.transpose(z_nchw, (0, 2, 3, 1))
    x = conv2d_ref(x, params["decoder_input"]["w"], params["decoder_input"]["b"])
    for p in params["mid"]:
        x = _ref_resblock(p, x)
    for dec in reversed(params["decoder"]):
        for bp in dec["blocks"]:
            x = _ref_resblock(bp, x)
        if "upsample" in dec:
            x = jnp.repeat(jnp.repeat(x, 2, axis=1), 2, axis=2)
            x = conv2d_ref(x, dec["upsample"]["w"], dec["upsample"]["b"])
    x = gn_silu_ref(x, params["out_gn"]["gamma"], params["out_gn"]["beta"], 32)
    x = conv2d_ref(x, params["out_conv"]["w"], params["out_conv"]["b"])
    return jnp.transpose(x, (0, 3, 1, 2))


pallas_forward_f32 = jax.jit(functools.partial(
    decoder_forward_pallas, compute_dtype=jnp.float32))
pallas_forward_bf16 = jax.jit(functools.partial(
    decoder_forward_pallas, compute_dtype=jnp.bfloat16))
ref_forward = jax.jit(decoder_forward_ref)


if __name__ == "__main__":
    key = jax.random.PRNGKey(0)
    k1, k2, k3, k4, k5, kz, kp = jax.random.split(key, 7)

    # ---- unit check: fused GN+SiLU -> 3x3 conv (+skip, +stats), multi-tile,
    #      non-multiple-of-8 width (exercises halo / alignment / mask paths) --
    N, H, W, Cin, Cout, G = 2, 16, 10, 16, 24, 4
    xs_ = jax.random.normal(k1, (N, H, W, Cin), jnp.float32)
    ws_ = jax.random.normal(k2, (3, 3, Cin, Cout), jnp.float32) * 0.05
    bs_ = jax.random.normal(k3, (Cout,), jnp.float32) * 0.01
    sk_ = jax.random.normal(k4, (N, H, W, Cout), jnp.float32) * 0.1
    gam = 1.0 + 0.1 * jax.random.normal(k5, (Cin,), jnp.float32)
    bet = 0.1 * jax.random.normal(k5, (Cin,), jnp.float32)

    in_stats = jnp.stack([xs_.sum((1, 2)), (xs_ * xs_).sum((1, 2))], axis=1)
    a_aff, b_aff = _gn_affine_from_stats(in_stats, gam, bet, H * W, G)

    conv_test = jax.jit(functools.partial(conv2d_pallas, tile_rows=4,
                                          emit_stats=True))
    got, got_stats = conv_test(xs_, ws_, bs_, sk_, (a_aff, b_aff))
    got = jax.block_until_ready(got)

    want = conv2d_ref(gn_silu_ref(xs_, gam, bet, G), ws_, bs_, sk_)
    want_stats = jnp.stack([want.sum((1, 2)), (want * want).sum((1, 2))], axis=1)
    assert got.shape == want.shape, (got.shape, want.shape)
    assert float(jnp.max(jnp.abs(got - want))) < 5e-2
    stat_tol = 2e-2 * float(jnp.max(jnp.abs(want_stats))) + 1.0
    assert float(jnp.max(jnp.abs(got_stats - want_stats))) < stat_tol

    # ---- unit check: 1x1 conv path (shortcut) ------------------------------
    w1 = jax.random.normal(k2, (1, 1, Cin, Cout), jnp.float32) * 0.05
    got1, _ = jax.jit(conv2d_pallas)(xs_, w1, bs_)
    got1 = jax.block_until_ready(got1)
    want1 = conv2d_ref(xs_, w1, bs_)
    assert float(jnp.max(jnp.abs(got1 - want1))) < 2e-2

    # ---- full decoder: out_channels=3, z_channels=3, base=32, 1 block,
    #      channel_multipliers=[1, 2] (one 2x upsample), 8x8 -> 16x16 ---------
    out_channels, z_channels = 3, 3
    base_channels, n_layer_blocks = 32, 1
    channel_multipliers = [1, 2]
    params = init_decoder(kp, out_channels, z_channels, base_channels,
                          n_layer_blocks, channel_multipliers)
    z = jax.random.normal(kz, (2, z_channels, 8, 8), jnp.float32)     # NCHW

    ref = jax.block_until_ready(ref_forward(params, z))

    out32 = jax.block_until_ready(pallas_forward_f32(params, z))
    assert out32.shape == (2, out_channels, 16, 16), out32.shape
    assert bool(jnp.all(jnp.isfinite(out32)))
    assert float(jnp.max(jnp.abs(out32 - ref))) < 5e-2

    out16 = jax.block_until_ready(pallas_forward_bf16(params, z))
    out16 = out16.astype(jnp.float32)
    assert out16.shape == (2, out_channels, 16, 16), out16.shape
    assert bool(jnp.all(jnp.isfinite(out16)))
    assert float(jnp.max(jnp.abs(out16 - ref))) < 2e-1

    print("KERNEL_OK")
</pallas_src>

<mosaic_0001>
module attributes {stable_mosaic.version = 11 : i64} {
  func.func @kernel(%arg0: i32, %arg1: i32, %arg2: memref<1x64x16xf32, #tpu.memory_space<vmem>>, %arg3: memref<1x64x16xf32, #tpu.memory_space<vmem>>, %arg4: memref<9x16x24xf32, #tpu.memory_space<vmem>>, %arg5: memref<1x24xf32, #tpu.memory_space<vmem>>, %arg6: memref<1x1x16xf32, #tpu.memory_space<vmem>>, %arg7: memref<1x1x16xf32, #tpu.memory_space<vmem>>, %arg8: memref<1x4x10x24xf32, #tpu.memory_space<vmem>>, %arg9: memref<1x4x10x24xf32, #tpu.memory_space<vmem>>, %arg10: memref<1x2x24xf32, #tpu.memory_space<vmem>>) attributes {dimension_semantics = [#tpu.dimension_semantics<parallel>, #tpu.dimension_semantics<arbitrary>], iteration_bounds = array<i64: 2, 4>, scalar_prefetch = 0 : i64, scratch_operands = 0 : i64, tpu.core_type = #tpu.core_type<tc>, window_params = [{transform_indices = @transform_0, window_bounds = array<i64: 1, 64, 16>}, {transform_indices = @transform_1, window_bounds = array<i64: 1, 64, 16>}, {pipeline_mode = #tpu.pipeline_mode<synchronous>, transform_indices = @transform_2, window_bounds = array<i64: 9, 16, 24>}, {pipeline_mode = #tpu.pipeline_mode<synchronous>, transform_indices = @transform_3, window_bounds = array<i64: 1, 24>}, {transform_indices = @transform_4, window_bounds = array<i64: 1, 1, 16>}, {transform_indices = @transform_5, window_bounds = array<i64: 1, 1, 16>}, {transform_indices = @transform_6, window_bounds = array<i64: 1, 4, 10, 24>}, {transform_indices = @transform_7, window_bounds = array<i64: 1, 4, 10, 24>}, {transform_indices = @transform_8, window_bounds = array<i64: 1, 2, 24>}]} {
    %c0 = arith.constant 0 : index
    %c0_0 = arith.constant 0 : index
    %c0_1 = arith.constant 0 : index
    %0 = vector.load %arg2[%c0, %c0_0, %c0_1] : memref<1x64x16xf32, #tpu.memory_space<vmem>>, vector<1x64x16xf32>
    %1 = vector.shape_cast %0 : vector<1x64x16xf32> to vector<64x16xf32>
    %c0_2 = arith.constant 0 : index
    %c0_3 = arith.constant 0 : index
    %c0_4 = arith.constant 0 : index
    %2 = vector.load %arg3[%c0_2, %c0_3, %c0_4] : memref<1x64x16xf32, #tpu.memory_space<vmem>>, vector<1x64x16xf32>
    %3 = vector.shape_cast %2 : vector<1x64x16xf32> to vector<64x16xf32>
    %4 = tpu.concatenate %1, %3 in 0 : vector<64x16xf32>, vector<64x16xf32> -> vector<128x16xf32>
    %c0_5 = arith.constant 0 : index
    %c0_6 = arith.constant 0 : index
    %c0_7 = arith.constant 0 : index
    %5 = vector.load %arg6[%c0_5, %c0_6, %c0_7] : memref<1x1x16xf32, #tpu.memory_space<vmem>>, vector<1x1x16xf32>
    %6 = vector.shape_cast %5 : vector<1x1x16xf32> to vector<1x16xf32>
    %c0_8 = arith.constant 0 : index
    %c0_9 = arith.constant 0 : index
    %c0_10 = arith.constant 0 : index
    %7 = vector.load %arg7[%c0_8, %c0_9, %c0_10] : memref<1x1x16xf32, #tpu.memory_space<vmem>>, vector<1x1x16xf32>
    %8 = vector.shape_cast %7 : vector<1x1x16xf32> to vector<1x16xf32>
    %9 = vector.broadcast %6 : vector<1x16xf32> to vector<128x16xf32>
    %10 = arith.mulf %4, %9 : vector<128x16xf32>
    %11 = vector.broadcast %8 : vector<1x16xf32> to vector<128x16xf32>
    %12 = arith.addf %10, %11 : vector<128x16xf32>
    %13 = arith.negf %12 : vector<128x16xf32>
    %14 = math.exp %13 : vector<128x16xf32>
    %cst = arith.constant 1.000000e+00 : f32
    %15 = vector.broadcast %cst : f32 to vector<128x16xf32>
    %16 = arith.addf %15, %14 : vector<128x16xf32>
    %17 = arith.divf %15, %16 : vector<128x16xf32>
    %18 = arith.mulf %12, %17 : vector<128x16xf32>
    %19 = vector.shape_cast %18 : vector<128x16xf32> to vector<8x16x16xf32>
    %20 = tpu.iota {dimensions = array<i32: 0>} : vector<8x16x1xi32>
    %c4_i32 = arith.constant 4 : i32
    %21 = arith.muli %arg1, %c4_i32 : i32
    %22 = vector.broadcast %21 : i32 to vector<8x16x1xi32>
    %23 = arith.addi %20, %22 : vector<8x16x1xi32>
    %24 = tpu.iota {dimensions = array<i32: 1>} : vector<8x16x1xi32>
    %c1_i32 = arith.constant 1 : i32
    %25 = vector.broadcast %c1_i32 : i32 to vector<8x16x1xi32>
    %26 = arith.cmpi sge, %23, %25 : vector<8x16x1xi32>
    %c17_i32 = arith.constant 17 : i32
    %27 = vector.broadcast %c17_i32 : i32 to vector<8x16x1xi32>
    %28 = arith.cmpi slt, %23, %27 : vector<8x16x1xi32>
    %29 = arith.andi %26, %28 : vector<8x16x1xi1>
    %c1_i32_11 = arith.constant 1 : i32
    %30 = vector.broadcast %c1_i32_11 : i32 to vector<8x16x1xi32>
    %31 = arith.cmpi sge, %24, %30 : vector<8x16x1xi32>
    %32 = arith.andi %29, %31 : vector<8x16x1xi1>
    %c11_i32 = arith.constant 11 : i32
    %33 = vector.broadcast %c11_i32 : i32 to vector<8x16x1xi32>
    %34 = arith.cmpi slt, %24, %33 : vector<8x16x1xi32>
    %35 = arith.andi %32, %34 : vector<8x16x1xi1>
    %cst_12 = arith.constant 0.000000e+00 : f32
    %36 = vector.shape_cast %35 : vector<8x16x1xi1> to vector<8x16x1xi1>
    %37 = vector.broadcast %36 : vector<8x16x1xi1> to vector<8x16x16xi1>
    %38 = vector.broadcast %cst_12 : f32 to vector<8x16x16xf32>
    %39 = arith.select %37, %19, %38 : vector<8x16x16xi1>, vector<8x16x16xf32>
    %40 = vector.shape_cast %39 : vector<8x16x16xf32> to vector<128x16xf32>
    %cst_13 = arith.constant 0.000000e+00 : f32
    %41 = vector.broadcast %cst_13 : f32 to vector<64x24xf32>
    %42 = vector.extract_strided_slice %40 {offsets = [0, 0], sizes = [64, 16], strides = [1, 1]} : vector<128x16xf32> to vector<64x16xf32>
    %c0_14 = arith.constant 0 : index
    %c0_15 = arith.constant 0 : index
    %c0_16 = arith.constant 0 : index
    %43 = vector.load %arg4[%c0_14, %c0_15, %c0_16] : memref<9x16x24xf32, #tpu.memory_space<vmem>>, vector<1x16x24xf32>
    %44 = vector.shape_cast %43 : vector<1x16x24xf32> to vector<16x24xf32>
    %cst_17 = arith.constant dense<0.000000e+00> : vector<64x24xf32>
    %45 = tpu.matmul %42, %44, %cst_17 {dimension_numbers = #tpu.dot_dimension_numbers<[1], [0], [0], [1], [0, 0, 1, 1], [], []>} : vector<64x16xf32>, vector<16x24xf32>, vector<64x24xf32> -> vector<64x24xf32>
    %46 = arith.addf %41, %45 : vector<64x24xf32>
    %47 = vector.extract_strided_slice %40 {offsets = [1, 0], sizes = [64, 16], strides = [1, 1]} : vector<128x16xf32> to vector<64x16xf32>
    %c1 = arith.constant 1 : index
    %c0_18 = arith.constant 0 : index
    %c0_19 = arith.constant 0 : index
    %48 = vector.load %arg4[%c1, %c0_18, %c0_19] : memref<9x16x24xf32, #tpu.memory_space<vmem>>, vector<1x16x24xf32>
    %49 = vector.shape_cast %48 : vector<1x16x24xf32> to vector<16x24xf32>
    %cst_20 = arith.constant dense<0.000000e+00> : vector<64x24xf32>
    %50 = tpu.matmul %47, %49, %cst_20 {dimension_numbers = #tpu.dot_dimension_numbers<[1], [0], [0], [1], [0, 0, 1, 1], [], []>} : vector<64x16xf32>, vector<16x24xf32>, vector<64x24xf32> -> vector<64x24xf32>
    %51 = arith.addf %46, %50 : vector<64x24xf32>
    %52 = vector.extract_strided_slice %40 {offsets = [2, 0], sizes = [64, 16], strides = [1, 1]} : vector<128x16xf32> to vector<64x16xf32>
    %c2 = arith.constant 2 : index
    %c0_21 = arith.constant 0 : index
    %c0_22 = arith.constant 0 : index
    %53 = vector.load %arg4[%c2, %c0_21, %c0_22] : memref<9x16x24xf32, #tpu.memory_space<vmem>>, vector<1x16x24xf32>
    %54 = vector.shape_cast %53 : vector<1x16x24xf32> to vector<16x24xf32>
    %cst_23 = arith.constant dense<0.000000e+00> : vector<64x24xf32>
    %55 = tpu.matmul %52, %54, %cst_23 {dimension_numbers = #tpu.dot_dimension_numbers<[1], [0], [0], [1], [0, 0, 1, 1], [], []>} : vector<64x16xf32>, vector<16x24xf32>, vector<64x24xf32> -> vector<64x24xf32>
    %56 = arith.addf %51, %55 : vector<64x24xf32>
    %57 = vector.extract_strided_slice %40 {offsets = [16, 0], sizes = [64, 16], strides = [1, 1]} : vector<128x16xf32> to vector<64x16xf32>
    %c3 = arith.constant 3 : index
    %c0_24 = arith.constant 0 : index
    %c0_25 = arith.constant 0 : index
    %58 = vector.load %arg4[%c3, %c0_24, %c0_25] : memref<9x16x24xf32, #tpu.memory_space<vmem>>, vector<1x16x24xf32>
    %59 = vector.shape_cast %58 : vector<1x16x24xf32> to vector<16x24xf32>
    %cst_26 = arith.constant dense<0.000000e+00> : vector<64x24xf32>
    %60 = tpu.matmul %57, %59, %cst_26 {dimension_numbers = #tpu.dot_dimension_numbers<[1], [0], [0], [1], [0, 0, 1, 1], [], []>} : vector<64x16xf32>, vector<16x24xf32>, vector<64x24xf32> -> vector<64x24xf32>
    %61 = arith.addf %56, %60 : vector<64x24xf32>
    %62 = vector.extract_strided_slice %40 {offsets = [17, 0], sizes = [64, 16], strides = [1, 1]} : vector<128x16xf32> to vector<64x16xf32>
    %c4 = arith.constant 4 : index
    %c0_27 = arith.constant 0 : index
    %c0_28 = arith.constant 0 : index
    %63 = vector.load %arg4[%c4, %c0_27, %c0_28] : memref<9x16x24xf32, #tpu.memory_space<vmem>>, vector<1x16x24xf32>
    %64 = vector.shape_cast %63 : vector<1x16x24xf32> to vector<16x24xf32>
    %cst_29 = arith.constant dense<0.000000e+00> : vector<64x24xf32>
    %65 = tpu.matmul %62, %64, %cst_29 {dimension_numbers = #tpu.dot_dimension_numbers<[1], [0], [0], [1], [0, 0, 1, 1], [], []>} : vector<64x16xf32>, vector<16x24xf32>, vector<64x24xf32> -> vector<64x24xf32>
    %66 = arith.addf %61, %65 : vector<64x24xf32>
    %67 = vector.extract_strided_slice %40 {offsets = [18, 0], sizes = [64, 16], strides = [1, 1]} : vector<128x16xf32> to vector<64x16xf32>
    %c5 = arith.constant 5 : index
    %c0_30 = arith.constant 0 : index
    %c0_31 = arith.constant 0 : index
    %68 = vector.load %arg4[%c5, %c0_30, %c0_31] : memref<9x16x24xf32, #tpu.memory_space<vmem>>, vector<1x16x24xf32>
    %69 = vector.shape_cast %68 : vector<1x16x24xf32> to vector<16x24xf32>
    %cst_32 = arith.constant dense<0.000000e+00> : vector<64x24xf32>
    %70 = tpu.matmul %67, %69, %cst_32 {dimension_numbers = #tpu.dot_dimension_numbers<[1], [0], [0], [1], [0, 0, 1, 1], [], []>} : vector<64x16xf32>, vector<16x24xf32>, vector<64x24xf32> -> vector<64x24xf32>
    %71 = arith.addf %66, %70 : vector<64x24xf32>
    %72 = vector.extract_strided_slice %40 {offsets = [32, 0], sizes = [64, 16], strides = [1, 1]} : vector<128x16xf32> to vector<64x16xf32>
    %c6 = arith.constant 6 : index
    %c0_33 = arith.constant 0 : index
    %c0_34 = arith.constant 0 : index
    %73 = vector.load %arg4[%c6, %c0_33, %c0_34] : memref<9x16x24xf32, #tpu.memory_space<vmem>>, vector<1x16x24xf32>
    %74 = vector.shape_cast %73 : vector<1x16x24xf32> to vector<16x24xf32>
    %cst_35 = arith.constant dense<0.000000e+00> : vector<64x24xf32>
    %75 = tpu.matmul %72, %74, %cst_35 {dimension_numbers = #tpu.dot_dimension_numbers<[1], [0], [0], [1], [0, 0, 1, 1], [], []>} : vector<64x16xf32>, vector<16x24xf32>, vector<64x24xf32> -> vector<64x24xf32>
    %76 = arith.addf %71, %75 : vector<64x24xf32>
    %77 = vector.extract_strided_slice %40 {offsets = [33, 0], sizes = [64, 16], strides = [1, 1]} : vector<128x16xf32> to vector<64x16xf32>
    %c7 = arith.constant 7 : index
    %c0_36 = arith.constant 0 : index
    %c0_37 = arith.constant 0 : index
    %78 = vector.load %arg4[%c7, %c0_36, %c0_37] : memref<9x16x24xf32, #tpu.memory_space<vmem>>, vector<1x16x24xf32>
    %79 = vector.shape_cast %78 : vector<1x16x24xf32> to vector<16x24xf32>
    %cst_38 = arith.constant dense<0.000000e+00> : vector<64x24xf32>
    %80 = tpu.matmul %77, %79, %cst_38 {dimension_numbers = #tpu.dot_dimension_numbers<[1], [0], [0], [1], [0, 0, 1, 1], [], []>} : vector<64x16xf32>, vector<16x24xf32>, vector<64x24xf32> -> vector<64x24xf32>
    %81 = arith.addf %76, %80 : vector<64x24xf32>
    %82 = vector.extract_strided_slice %40 {offsets = [34, 0], sizes = [64, 16], strides = [1, 1]} : vector<128x16xf32> to vector<64x16xf32>
    %c8 = arith.constant 8 : index
    %c0_39 = arith.constant 0 : index
    %c0_40 = arith.constant 0 : index
    %83 = vector.load %arg4[%c8, %c0_39, %c0_40] : memref<9x16x24xf32, #tpu.memory_space<vmem>>, vector<1x16x24xf32>
    %84 = vector.shape_cast %83 : vector<1x16x24xf32> to vector<16x24xf32>
    %cst_41 = arith.constant dense<0.000000e+00> : vector<64x24xf32>
    %85 = tpu.matmul %82, %84, %cst_41 {dimension_numbers = #tpu.dot_dimension_numbers<[1], [0], [0], [1], [0, 0, 1, 1], [], []>} : vector<64x16xf32>, vector<16x24xf32>, vector<64x24xf32> -> vector<64x24xf32>
    %86 = arith.addf %81, %85 : vector<64x24xf32>
    %c0_42 = arith.constant 0 : index
    %c0_43 = arith.constant 0 : index
    %87 = vector.load %arg5[%c0_42, %c0_43] : memref<1x24xf32, #tpu.memory_space<vmem>>, vector<1x24xf32>
    %88 = vector.broadcast %87 : vector<1x24xf32> to vector<64x24xf32>
    %89 = arith.addf %86, %88 : vector<64x24xf32>
    %90 = vector.shape_cast %89 : vector<64x24xf32> to vector<4x16x24xf32>
    %91 = vector.extract_strided_slice %90 {offsets = [0, 0, 0], sizes = [4, 10, 24], strides = [1, 1, 1]} : vector<4x16x24xf32> to vector<4x10x24xf32>
    %c0_44 = arith.constant 0 : index
    %c0_45 = arith.constant 0 : index
    %c0_46 = arith.constant 0 : index
    %c0_47 = arith.constant 0 : index
    %92 = vector.load %arg8[%c0_44, %c0_45, %c0_46, %c0_47] : memref<1x4x10x24xf32, #tpu.memory_space<vmem>>, vector<1x4x10x24xf32>
    %93 = vector.shape_cast %92 : vector<1x4x10x24xf32> to vector<4x10x24xf32>
    %94 = arith.addf %91, %93 : vector<4x10x24xf32>
    %c0_48 = arith.constant 0 : index
    %c0_49 = arith.constant 0 : index
    %c0_50 = arith.constant 0 : index
    %c0_51 = arith.constant 0 : index
    %95 = vector.load %arg9[%c0_48, %c0_49, %c0_50, %c0_51] : memref<1x4x10x24xf32, #tpu.memory_space<vmem>>, vector<1x4x10x24xf32>
    %96 = vector.shape_cast %95 : vector<1x4x10x24xf32> to vector<4x10x24xf32>
    %97 = vector.shape_cast %94 : vector<4x10x24xf32> to vector<1x4x10x24xf32>
    tpu.vector_store %arg9[%c0_48, %c0_49, %c0_50, %c0_51], %97 {strides = array<i32>} : memref<1x4x10x24xf32, #tpu.memory_space<vmem>>, vector<1x4x10x24xf32>,
    %c0_i32 = arith.constant 0 : i32
    %98 = arith.cmpi eq, %arg1, %c0_i32 : i32
    %99 = arith.extui %98 : i1 to i32
    %c0_i32_52 = arith.constant 0 : i32
    %100 = arith.cmpi ne, %99, %c0_i32_52 : i32
    scf.if %100 {
      %cst_61 = arith.constant 0.000000e+00 : f32
      %113 = vector.broadcast %cst_61 : f32 to vector<2x24xf32>
      %c0_62 = arith.constant 0 : index
      %c0_63 = arith.constant 0 : index
      %c0_64 = arith.constant 0 : index
      %114 = vector.load %arg10[%c0_62, %c0_63, %c0_64] : memref<1x2x24xf32, #tpu.memory_space<vmem>>, vector<1x2x24xf32>
      %115 = vector.shape_cast %114 : vector<1x2x24xf32> to vector<2x24xf32>
      %116 = vector.shape_cast %113 : vector<2x24xf32> to vector<1x2x24xf32>
      tpu.vector_store %arg10[%c0_62, %c0_63, %c0_64], %116 {strides = array<i32>} : memref<1x2x24xf32, #tpu.memory_space<vmem>>, vector<1x2x24xf32>,
    } else {
    }
    %cst_53 = arith.constant dense<0.000000e+00> : vector<24xf32>
    %101 = vector.multi_reduction <add>, %94, %cst_53 [0, 1] : vector<4x10x24xf32> to vector<24xf32>
    %102 = vector.shape_cast %101 : vector<24xf32> to vector<1x24xf32>
    %103 = arith.mulf %94, %94 : vector<4x10x24xf32>
    %cst_54 = arith.constant dense<0.000000e+00> : vector<24xf32>
    %104 = vector.multi_reduction <add>, %103, %cst_54 [0, 1] : vector<4x10x24xf32> to vector<24xf32>
    %105 = vector.shape_cast %104 : vector<24xf32> to vector<1x24xf32>
    %c0_55 = arith.constant 0 : index
    %c0_56 = arith.constant 0 : index
    %c0_57 = arith.constant 0 : index
    %106 = vector.load %arg10[%c0_55, %c0_56, %c0_57] : memref<1x2x24xf32, #tpu.memory_space<vmem>>, vector<1x2x24xf32>
    %107 = vector.shape_cast %106 : vector<1x2x24xf32> to vector<2x24xf32>
    %108 = tpu.concatenate %102, %105 in 0 : vector<1x24xf32>, vector<1x24xf32> -> vector<2x24xf32>
    %109 = arith.addf %107, %108 : vector<2x24xf32>
    %c0_58 = arith.constant 0 : index
    %c0_59 = arith.constant 0 : index
    %c0_60 = arith.constant 0 : index
    %110 = vector.load %arg10[%c0_58, %c0_59, %c0_60] : memref<1x2x24xf32, #tpu.memory_space<vmem>>, vector<1x2x24xf32>
    %111 = vector.shape_cast %110 : vector<1x2x24xf32> to vector<2x24xf32>
    %112 = vector.shape_cast %109 : vector<2x24xf32> to vector<1x2x24xf32>
    tpu.vector_store %arg10[%c0_58, %c0_59, %c0_60], %112 {strides = array<i32>} : memref<1x2x24xf32, #tpu.memory_space<vmem>>, vector<1x2x24xf32>,
    return
  }
  func.func @transform_0(%arg0: i32, %arg1: i32) -> (i32, i32, i32) {
    %c0_i32 = arith.constant 0 : i32
    %c0_i32_0 = arith.constant 0 : i32
    return %arg0, %arg1, %c0_i32 : i32, i32, i32
  }
  func.func @transform_1(%arg0: i32, %arg1: i32) -> (i32, i32, i32) {
    %c1_i32 = arith.constant 1 : i32
    %0 = arith.addi %arg1, %c1_i32 : i32
    %c1_i32_0 = arith.constant 1 : i32
    %1 = arith.muli %0, %c1_i32_0 : i32
    %c0_i32 = arith.constant 0 : i32
    %c0_i32_1 = arith.constant 0 : i32
    return %arg0, %1, %c0_i32 : i32, i32, i32
  }
  func.func @transform_2(%arg0: i32, %arg1: i32) -> (i32, i32, i32) {
    %c0_i32 = arith.constant 0 : i32
    %c0_i32_0 = arith.constant 0 : i32
    %c0_i32_1 = arith.constant 0 : i32
    %c0_i32_2 = arith.constant 0 : i32
    return %c0_i32, %c0_i32_0, %c0_i32_1 : i32, i32, i32
  }
  func.func @transform_3(%arg0: i32, %arg1: i32) -> (i32, i32) {
    %c0_i32 = arith.constant 0 : i32
    %c0_i32_0 = arith.constant 0 : i32
    %c0_i32_1 = arith.constant 0 : i32
    return %c0_i32, %c0_i32_0 : i32, i32
  }
  func.func @transform_4(%arg0: i32, %arg1: i32) -> (i32, i32, i32) {
    %c0_i32 = arith.constant 0 : i32
    %c0_i32_0 = arith.constant 0 : i32
    %c0_i32_1 = arith.constant 0 : i32
    return %arg0, %c0_i32, %c0_i32_0 : i32, i32, i32
  }
  func.func @transform_5(%arg0: i32, %arg1: i32) -> (i32, i32, i32) {
    %c0_i32 = arith.constant 0 : i32
    %c0_i32_0 = arith.constant 0 : i32
    %c0_i32_1 = arith.constant 0 : i32
    return %arg0, %c0_i32, %c0_i32_0 : i32, i32, i32
  }
  func.func @transform_6(%arg0: i32, %arg1: i32) -> (i32, i32, i32, i32) {
    %c0_i32 = arith.constant 0 : i32
    %c0_i32_0 = arith.constant 0 : i32
    %c0_i32_1 = arith.constant 0 : i32
    return %arg0, %arg1, %c0_i32, %c0_i32_0 : i32, i32, i32, i32
  }
  func.func @transform_7(%arg0: i32, %arg1: i32) -> (i32, i32, i32, i32) {
    %c0_i32 = arith.constant 0 : i32
    %c0_i32_0 = arith.constant 0 : i32
    %c0_i32_1 = arith.constant 0 : i32
    return %arg0, %arg1, %c0_i32, %c0_i32_0 : i32, i32, i32, i32
  }
  func.func @transform_8(%arg0: i32, %arg1: i32) -> (i32, i32, i32) {
    %c0_i32 = arith.constant 0 : i32
    %c0_i32_0 = arith.constant 0 : i32
    %c0_i32_1 = arith.constant 0 : i32
    return %arg0, %c0_i32, %c0_i32_0 : i32, i32, i32
  }
}

</mosaic_0001>

<bundles_post_ra>
// kernel: conv2d_pallas.1
= control target key start
LH: loop header
LB: loop body
LE: loop exit
PB: predicated region body
PF: predicated region fallthrough
CT: control target
= control target key end

     0   :  { %14 = vsyncpa [#allocation3], 0  ;;  %s3237_s0 = inlined_call_operand.vmem [shape: f32[2,336,16], index: 0, kind: input, shape index: {}, may-alias: {0,1}]   ;;  %s3238_s1 = inlined_call_operand.vmem [shape: f32[2,336,16], index: 1, kind: input, shape index: {}, may-alias: {0,1}]   ;;  %s3239_s2 = inlined_call_operand.vmem [shape: f32[9,16,24], index: 2, kind: input, shape index: {}]   ;;  %s3240_s3 = inlined_call_operand.vmem [shape: f32[1,24], index: 3, kind: input, shape index: {}]   ;;  %s3241_s4 = inlined_call_operand.vmem [shape: f32[2,1,16], index: 4, kind: input, shape index: {}]   ;;  %s3242_s5 = inlined_call_operand.vmem [shape: f32[2,1,16], index: 5, kind: input, shape index: {}]   ;;  %s3243_s6 = inlined_call_operand.vmem [shape: f32[2,16,10,24], index: 6, kind: input, shape index: {}]   ;;  %s3244_s7 = inlined_call_operand.vmem [shape: f32[2,16,10,24], index: 7, kind: output, shape index: {0}]   ;;  %s3245_s8 = inlined_call_operand.hbm [shape: f32[2,2,24], index: 8, kind: output, shape index: {1}]  }
   0x1   :  { %16 = vsyncpa [#allocation3 + $0x1], 0  ;;  %s2211_s27 = smov 0   ;;  %s2213_s28 = smov 0  }
   0x2   :  { %s2215_s29 = smov 0   ;;  %s2217_s30 = smov 0  }
   0x3   :  { %s2219_s9 = smov 0   ;;  %s2221_s10 = smov 0  }
   0x4   :  { %s2223_s11 = smov 0   ;;  %s2225_s12 = smov 0  }
   0x5 LB: > { %3252 = sst [smem:[#allocation5_spill]] %s2143_s29  ;;  %s1808_s13 = sadd.s32 4294967295, %s2163_s12   ;;  %s2163_s12 = sphi %s2225_s12, %s22_s12   ;;  %s2159_s11 = sphi %s2223_s11, %s3403_s11   ;;  %s2155_s10 = sphi %s2221_s10, %s3402_s10   ;;  %s2151_s9 = sphi %s2219_s9, %s3401_s9   ;;  %s2147_s30 = sphi %s2217_s30, %s3400_s30   ;;  %s2143_s29 = sphi %s2215_s29, %s3399_s29   ;;  %s2139_s28 = sphi %s2213_s28, %s3405_s28   ;;  %s2135_s27 = sphi %s2211_s27, %s3404_s27  }
   0x6   : > { %3253 = sst [smem:[#allocation6_spill]] %s2155_s10  ;;  %s1809_s14 = sadd.s32 4294967294, %s2163_s12  }
   0x7   : > { %3254 = sst [smem:[#allocation7_spill]] %s2159_s11  ;;  %s31_s15 = sadd.s32 1, %s2155_s10 }
   0x8   : > { %p32_p0 = scmp.ge.s32.totalorder %s31_s15, 4  ;;  %s34_s16 = sadd.s32 1, %s2159_s11 }
   0x9   : > { %p259_p1 = scmp.ne.s32.totalorder %s2143_s29, %s2139_s28  ;;  %p260_p2 = scmp.eq.s32.totalorder %s1808_s13, 7 }
   0xa   : > { %s3407_s15 = smov (%p32_p0, %s31_s15), 0  ;;  %s3409_s16 = smov (!%p32_p0, %s34_s16), %s2159_s11 }
   0xb   : > { %3255 = sst [smem:[#allocation8_spill]] %s3407_s15  ;;  %p2260_p3 = por %p260_p2, %p259_p1 }
   0xc   : > { %p265_p4 = scmp.ne.s32.totalorder %s2139_s28, %s2135_s27  ;;  %p36_p5 = scmp.ge.s32.totalorder %s3409_s16, 2 }
   0xd   : > { %p266_p6 = scmp.eq.s32.totalorder %s1809_s14, 7  ;;  %p1812_p7 = scmp.ge.s32.totalorder %s2163_s12, 1 }
   0xe   : > { %p360_p8 = scmp.lt.s32.totalorder %s2163_s12, 9  ;;  %s3411_s16 = smov (%p36_p5, %s3409_s16), 0 }
   0xf   : > { %3257 = sst [smem:[#allocation9_spill]] %s3411_s16  ;;  %p2270_p9 = por %p266_p6, %p265_p4 }
  0x10   : > { %p361_p10 = pnand %p1812_p7, %p360_p8  ;;  %s246_s19 = ssub.s32 %s2159_s11, %s3411_s16 }
  0x11   : > { %s3258_s18 = scalar_select %p2270_p9, 1, 0 }
  0x12   : > { %s249_s20 = sadd.s32 1, %s2143_s29  ;;  %p247_p11 = scmp.eq.s32.totalorder %s246_s19, 0 }
  0x13   : > { %3259 = sst [smem:[#allocation10_spill]] %s3258_s18  ;;  %364 = sbr.rel (%p361_p10) target bundleno = 416 (0x1a0), region = 48 }
  0x14   : > { %s2278_s21 = scalar_select %p247_p11, %s2143_s29, %s249_s20  }
  0x15   : > { %s2287_s26 = sshll.u32 (!%p361_p10), %s2147_s30, 3  ;;  %p447_p12 = scmp.lt.s32.totalorder (!%p361_p10), %s2151_s9, 1 }
  0x16   : > { %3260 = sst [smem:[#allocation11_spill]] %s2278_s21  ;;  %p449_p13 = scmp.lt.s32.totalorder (!%p361_p10), %s2287_s26, 41 }
  0x17   : > { %s439_s15 = sand.u32 (!%p361_p10), 1, %s2139_s28   ;;  %s1934_s22 = sadd.s32 (!%p361_p10), 8, %s2287_s26 }
  0x18   : > { %v1841_v0 = vld [vmem:[%s3239_s2 + $0x18] sm:$0xff]  ;;  %v1840_v1 = vld [vmem:[%s3239_s2 + $0x10] sm:$0xff]  ;;  %s2292_s13 = scalar_select %p447_p12, %s2151_s9, 1  ;;  %v823_v24 = vlaneseq  ;;  %v1859_v38 = vld [vmem:[%s3239_s2 + $0x28] sm:$0xff] }
  0x19   : > { %1935 = vmatpush.msra.mxu1 %v1841_v0  ;;  %1936 = vmatpush.msra.mxu2 %v1841_v0  ;;  %s450_s14 = scalar_select %p449_p13, %s2287_s26, 41  ;;  %v1869_v59 = vld [vmem:[%s3239_s2 + $0x38] sm:$0xff]  ;;  %v917_v60 = vld [vmem:[%s3239_s2 + $0x8] sm:$0xff] }
  0x1a   : > { %1937 = vmatpush.msra.mxu3 %v1841_v0  ;;  %979 = vmatpush.msra.mxu0 %v1841_v0  ;;  %s1941_s19 = smul.u32 42, %s2292_s13  ;;  %s482_s23 = scalar_lea.vmem %s3241_s4, %s2292_s13  ;;  %v2364_v34 = vshrl.u32 %v823_v24, 7 }
  0x1b   : > { %1938 = vmatpush.msra.mxu1 %v1840_v1  ;;  %1939 = vmatpush.msra.mxu2 %v1840_v1  ;;  %s485_s16 = scalar_lea.vmem %s3242_s5, %s2292_s13  ;;  %v2307_v2 = vld [vmem:[%s482_s23] ss:$0 sm:$0xff]  ;;  %s2311_s10 = sshll.u32 %s439_s15, 1 }
  0x1c   : > { %1940 = vmatpush.msra.mxu3 %v1840_v1  ;;  %980 = vmatpush.msra.mxu0 %v1840_v1  ;;  %s452_s11 = sadd.s32 %s1941_s19, %s450_s14  ;;  %v2316_v3 = vld [vmem:[%s485_s16] ss:$0 sm:$0xff]  ;;  %p468_p0 = scmp.lt.s32.totalorder %s1934_s22, 41  ;;  %v2382_v43 = vadd.s32 8, %v2364_v34  ;;  %vm3251_vm2 = vcmp.ge.s32.totalorder %v2364_v34, 1 }
  0x1d   : > { %s1815_s21 = sshll.u32 %s452_s11, 3  ;;  %s2340_s11 = sshll.u32 %s2147_s30, 2  ;;  %1114 = vmatpush.msrb.mxu2 %v1859_v38  ;;  %1036 = vmatpush.msrb.mxu1 %v917_v60  ;;  %v1858_v1 = vld [vmem:[%s3239_s2 + $0x20] sm:$0xff] }
  0x1e   : > { %s454_s20 = scalar_lea.vmem %s3237_s0, %s1815_s21  ;;  %s3413_s22 = smov (!%p468_p0, %s1934_s22), 41  ;;  %v2355_v31 = vstv %s2340_s11  ;;  %vm863_vm3 = vcmp.lt.s32.totalorder %v2382_v43, 11  ;;  %1171 = vmatpush.msrb.mxu3 %v1869_v59 }
  0x1f   : > { %v510_v4 = vld [vmem:[%s454_s20 + $0x10] sm:$0xff]  ;;  %v511_v5 = vld [vmem:[%s454_s20 + $0x18] sm:$0xff]  ;;  %v512_v6 = vld [vmem:[%s454_s20 + $0x20] sm:$0xff]  ;;  %s471_s29 = sadd.s32 %s1941_s19, %s3413_s22  ;;  %v2370_v36 = vadd.s32 1, %v2355_v31  ;;  %v2394_v50 = vadd.s32 2, %v2355_v31  ;;  %v2400_v54 = vadd.s32 3, %v2355_v31  ;;  %1115 = vmatpush.msrb.mxu2 %v1858_v1 }
  0x20   : > { %v528_v7 = vmul.f32 %v2307_v2, %v510_v4  ;;  %v529_v8 = vmul.f32 %v2307_v2, %v511_v5  ;;  %v513_v9 = vld [vmem:[%s454_s20 + $0x28] sm:$0xff]  ;;  %v514_v10 = vld [vmem:[%s454_s20 + $0x30] sm:$0xff]  ;;  %v515_v11 = vld [vmem:[%s454_s20 + $0x38] sm:$0xff]  ;;  %v530_v12 = vmul.f32 %v2307_v2, %v512_v6  ;;  %s1817_s16 = sshll.u32 %s471_s29, 3  ;;  %p489_p1 = scmp.lt.s32.totalorder %s2340_s11, 15 }
  0x21   : > { %v531_v13 = vmul.f32 %v2307_v2, %v513_v9  ;;  %v532_v16 = vmul.f32 %v2307_v2, %v514_v10  ;;  %v533_v19 = vmul.f32 %v2307_v2, %v515_v11  ;;  %v508_v20 = vld [vmem:[%s454_s20] sm:$0xff]  ;;  %v509_v21 = vld [vmem:[%s454_s20 + $0x8] sm:$0xff]  ;;  %s2362_s26 = scalar_lea.vmem %s3238_s1, %s1817_s16  ;;  %vm827_vm0 = vcmp.ge.s32.totalorder %v2370_v36, 1  ;;  %s1820_s21 = sshll.u32 %s2292_s13, 5 }
  0x22   : > { %v2324_v14 = vadd.f32 %v2316_v3, %v528_v7  ;;  %v2327_v15 = vadd.f32 %v2316_v3, %v529_v8  ;;  %v2331_v17 = vadd.f32 %v2316_v3, %v530_v12  ;;  %v526_v29 = vmul.f32 %v2307_v2, %v508_v20  ;;  %v516_v39 = vld [vmem:[%s2362_s26] sm:$0xff]  ;;  %s3415_s11 = smov (!%p489_p1, %s2340_s11), 15  ;;  %s3156_s16 = scalar_lea.vmem [#allocation2], %s2311_s10 }
  0x23   : > { %v2334_v18 = vadd.f32 %v2316_v3, %v531_v13  ;;  %v2347_v27 = vadd.f32 %v2316_v3, %v532_v16  ;;  %v2350_v28 = vadd.f32 %v2316_v3, %v533_v19  ;;  %v527_v30 = vmul.f32 %v2307_v2, %v509_v21  ;;  %p1928_p2 = scmp.ne.s32.totalorder %s2147_s30, 0 }
  0x24   : > { %v1828_v22 = vmul.f32 -1.442695, %v2324_v14  ;;  %v1829_v23 = vmul.f32 -1.442695, %v2327_v15  ;;  %v1830_v25 = vmul.f32 -1.442695, %v2331_v17  ;;  %v2367_v35 = vadd.f32 %v2316_v3, %v526_v29 }
  0x25   : > { %v1831_v26 = vmul.f32 -1.442695, %v2334_v18  ;;  %v1832_v32 = vmul.f32 -1.442695, %v2347_v27  ;;  %v1833_v33 = vmul.f32 -1.442695, %v2350_v28  ;;  %v2373_v37 = vadd.f32 %v2316_v3, %v527_v30 }
  0x26   : > { %2017 = vpow2.f32 %v1828_v22  ;;  %v1826_v44 = vmul.f32 -1.442695, %v2367_v35  ;;  %v534_v48 = vmul.f32 %v2307_v2, %v516_v39  ;;  %vm834_vm1 = vcmp.lt.s32.totalorder %v2370_v36, 17 }
  0x27   : > { %2019 = vpow2.f32 %v1829_v23  ;;  %v1827_v47 = vmul.f32 -1.442695, %v2373_v37  ;;  %vm2460_vm12 = vmand %vm827_vm0, %vm834_vm1 }
  0x28   : > { %2021 = vpow2.f32 %v1830_v25  ;;  %v2418_v63 = vadd.f32 %v2316_v3, %v534_v48  ;;  %vm2488_vm13 = vmand %vm2460_vm12, %vm3251_vm2 }
  0x29   : > { %2023 = vpow2.f32 %v1831_v26  ;;  %vm2524_vm7 = vmand %vm2460_vm12, %vm863_vm3 }
  0x2a   : > { %2025 = vpow2.f32 %v1832_v32 }
  0x2b   : > { %2027 = vpow2.f32 %v1833_v33 }
  0x2c   : > { %v2018_v40 = vpop.eup %2017 }
  0x2d   : > { %v2020_v41 = vpop.eup %2019  ;;  %v2379_v42 = vadd.f32 1.0, %v2018_v40 }
  0x2e   : > { %v2022_v45 = vpop.eup %2021  ;;  %v2385_v46 = vadd.f32 1.0, %v2020_v41 }
  0x2f   : > { %v2024_v49 = vpop.eup %2023  ;;  %2029 = vrcp.f32 %v2379_v42  ;;  %v646_v52 = vand.u32 2147483647, %v2379_v42  ;;  %v648_v53 = vand.u32 2147483648, %v2379_v42  ;;  %v2403_v57 = vadd.f32 1.0, %v2022_v45 }
  0x30   : > { %v2026_v51 = vpop.eup %2025  ;;  %2031 = vrcp.f32 %v2385_v46  ;;  %v661_v56 = vand.u32 2147483647, %v2385_v46  ;;  %v2405_v58 = vadd.f32 1.0, %v2024_v49  ;;  %v663_v61 = vand.u32 2147483648, %v2385_v46 }
  0x31   : > { %v2028_v55 = vpop.eup %2027  ;;  %2033 = vpow2.f32 %v1826_v44  ;;  %v2415_v62 = vadd.f32 1.0, %v2026_v51  ;;  %vm642_vm4 = vweird.f32 %v2379_v42  ;;  %vm657_vm5 = vweird.f32 %v2385_v46 }
  0x32   : > { %2035 = vpow2.f32 %v1827_v47  ;;  %v678_v0 = vand.u32 2147483648, %v2403_v57  ;;  %vm2429_vm8 = vcmp.eq.f32.partialorder %v646_v52, 8.507059e+37  ;;  %v2433_v5 = vor.u32 1.1754944e-38, %v648_v53 }
  0x33   : > { %2037 = vrcp.f32 %v2403_v57  ;;  %v676_v6 = vand.u32 2147483647, %v2403_v57  ;;  %v2437_v7 = vadd.f32 1.0, %v2028_v55  ;;  %vm2441_vm9 = vcmp.eq.f32.partialorder %v661_v56, 8.507059e+37 }
  0x34   : > { %2039 = vrcp.f32 %v2405_v58  ;;  %v691_v10 = vand.u32 2147483647, %v2405_v58  ;;  %v693_v11 = vand.u32 2147483648, %v2405_v58  ;;  %v664_v16 = vor.u32 1.1754944e-38, %v663_v61 }
  0x35   : > { %v2439_v8 = vpop.eup %2029  ;;  %2041 = vrcp.f32 %v2415_v62  ;;  %v2464_v22 = vor.u32 1.1754944e-38, %v678_v0  ;;  %v706_v23 = vand.u32 2147483647, %v2415_v62  ;;  %v708_v24 = vand.u32 2147483648, %v2415_v62 }
  0x36   : > { %v2448_v12 = vpop.eup %2031  ;;  %v638_v13 = vmul.f32 %v2439_v8, %v2379_v42  ;;  %vm643_vm15 = vweird.f32 %v2439_v8  ;;  %vm2471_vm11 = vcmp.eq.f32.partialorder %v676_v6, 8.507059e+37  ;;  %2043 = vrcp.f32 %v2437_v7 }
  0x37   : > { %v2034_v19 = vpop.eup %2033  ;;  %v653_v20 = vmul.f32 %v2448_v12, %v2385_v46  ;;  %vm658_vm1 = vweird.f32 %v2448_v12  ;;  %vm2478_vm10 = vcmp.eq.f32.partialorder %v691_v10, 8.507059e+37  ;;  %v694_v36 = vor.u32 1.1754944e-38, %v693_v11  ;;  %vm2501_vm0 = vmor %vm642_vm4, %vm643_vm15 }
  0x38   : > { %v2036_v25 = vpop.eup %2035  ;;  %v639_v26 = vsub.f32 1.0, %v638_v13  ;;  %v721_v38 = vand.u32 2147483647, %v2437_v7  ;;  %vm2493_vm14 = vcmp.eq.f32.partialorder %v706_v23, 8.507059e+37  ;;  %v709_v47 = vor.u32 1.1754944e-38, %v708_v24  ;;  %vm2514_vm4 = vmor %vm657_vm5, %vm658_vm1 }
  0x39   : > { %v2038_v30 = vpop.eup %2037  ;;  %v654_v32 = vsub.f32 1.0, %v653_v20  ;;  %v723_v53 = vand.u32 2147483648, %v2437_v7  ;;  %v2528_v0 = vadd.f32 1.0, %v2034_v19  ;;  %vm3281_vm1 = vcmp.lt.s32.totalorder %v2394_v50, 17 }
  0x3a   : > { %v2040_v39 = vpop.eup %2039  ;;  %v640_v40 = vmul.f32 %v2439_v8, %v639_v26  ;;  %v668_v44 = vmul.f32 %v2038_v30, %v2403_v57  ;;  %vm673_vm6 = vweird.f32 %v2038_v30  ;;  %vm3282_vm15 = vcmp.ge.s32.totalorder %v2394_v50, 1  ;;  %v916_v50 = vld [vmem:[%s3239_s2] sm:$0xff] }
  0x3b   : > { %v2042_v48 = vpop.eup %2041  ;;  %v655_v51 = vmul.f32 %v2448_v12, %v654_v32  ;;  %v683_v52 = vmul.f32 %v2040_v39, %v2405_v58  ;;  %vm2537_vm2 = vmand %vm3282_vm15, %vm3281_vm1  ;;  %v2541_v20 = vadd.f32 1.0, %v2036_v25  ;;  %vm3285_vm12 = vweird.f32 %v2403_v57  ;;  %1037 = vmatpush.msrb.mxu1 %v916_v50 }
  0x3c   : > { %v641_v55 = vadd.f32 %v2439_v8, %v640_v40  ;;  %v669_v56 = vsub.f32 1.0, %v668_v44  ;;  %v698_v59 = vmul.f32 %v2042_v48, %v2415_v62  ;;  %vm703_vm5 = vweird.f32 %v2042_v48  ;;  %v2044_v1 = vpop.eup %2043 }
  0x3d   : > { %v656_v60 = vadd.f32 %v2448_v12, %v655_v51  ;;  %v684_v46 = vsub.f32 1.0, %v683_v52  ;;  %v713_v23 = vmul.f32 %v2044_v1, %v2437_v7  ;;  %vm3289_vm15 = vweird.f32 %v2405_v58 }
  0x3e   : > { %v645_v6 = vsel %vm2501_vm0, %v2439_v8, %v641_v55  ;;  %v670_v10 = vmul.f32 %v2038_v30, %v669_v56  ;;  %v699_v13 = vsub.f32 1.0, %v698_v59  ;;  %vm2552_vm0 = vmor %vm3285_vm12, %vm673_vm6  ;;  %vm3292_vm6 = vweird.f32 %v2415_v62 }
  0x3f   : > { %v650_v19 = vsel %vm2429_vm8, %v2433_v5, %v645_v6  ;;  %v660_v8 = vsel %vm2514_vm4, %v2448_v12, %v656_v60  ;;  %v685_v21 = vmul.f32 %v2040_v39, %v684_v46  ;;  %vm3288_vm8 = vweird.f32 %v2040_v39  ;;  %vm2571_vm1 = vmor %vm3292_vm6, %vm703_vm5 }
  0x40   : > { %v665_v24 = vsel %vm2441_vm9, %v664_v16, %v660_v8  ;;  %v804_v4 = vmul.f32 %v650_v19, %v2324_v14  ;;  %v671_v5 = vadd.f32 %v2038_v30, %v670_v10  ;;  %vm2563_vm4 = vmor %vm3289_vm15, %vm3288_vm8  ;;  %v700_v57 = vmul.f32 %v2042_v48, %v699_v13  ;;  %v1868_v13 = vld [vmem:[%s3239_s2 + $0x30] sm:$0xff] }
  0x41   : > { %v805_v25 = vmul.f32 %v665_v24, %v2327_v15  ;;  %v686_v26 = vadd.f32 %v2040_v39, %v685_v21  ;;  %v714_v14 = vsub.f32 1.0, %v713_v23  ;;  %vm718_vm9 = vweird.f32 %v2044_v1  ;;  %1172 = vmatpush.msrb.mxu3 %v1868_v13  ;;  %v1899_v21 = vld [vmem:[%s3239_s2 + $0x68] sm:$0xff] }
  0x42   : > { %v2577_v58 = vsel %vm2488_vm13, %v804_v4, 0.0  ;;  %v675_v16 = vsel %vm2552_vm0, %v2038_v30, %v671_v5  ;;  %v701_v32 = vadd.f32 %v2042_v48, %v700_v57  ;;  %vm3295_vm12 = vcmp.lt.s32.totalorder %v2400_v54, 17 }
  0x43   : > { %vm3296_vm8 = vcmp.ge.s32.totalorder %v2400_v54, 1  ;;  %2045 = vrcp.f32 %v2528_v0  ;;  %v2592_v62 = vsel %vm2524_vm7, %v805_v25, 0.0  ;;  %v934_v40 = vrot.slane %v2577_v58, 1  ;;  %vm869_vm7 = vmand %vm2537_vm2, %vm863_vm3 }
  0x44   : > { %vm2585_vm15 = vmand %vm3296_vm8, %vm3295_vm12  ;;  %v680_v30 = vsel %vm2471_vm11, %v2464_v22, %v675_v16  ;;  %v690_v41 = vsel %vm2563_vm4, %v2040_v39, %v686_v26  ;;  %vm3299_vm13 = vcmp.ge.s32.totalorder %v2364_v34, 1  ;;  %v936_v54 = vrot.slane %v2592_v62, 1 }
  0x45   : > { %vm853_vm5 = vmand %vm2537_vm2, %vm3299_vm13  ;;  %v695_v44 = vsel %vm2478_vm10, %v694_v36, %v690_v41  ;;  %v806_v49 = vmul.f32 %v680_v30, %v2331_v17  ;;  %v705_v22 = vsel %vm2571_vm1, %v2042_v48, %v701_v32  ;;  %v715_v51 = vmul.f32 %v2044_v1, %v714_v14 }
  0x46   : > { %v807_v29 = vmul.f32 %v695_v44, %v2334_v18  ;;  %v710_v39 = vsel %vm2493_vm14, %v709_v47, %v705_v22  ;;  %vm3300_vm11 = vmmov %vm3299_vm13  ;;  %vm3303_vm2 = vcmask 1046528   ;;  %vm3304_vm0 = vweird.f32 %v2437_v7 }
  0x47   : > { %vm2621_vm10 = vmand %vm2585_vm15, %vm3300_vm11  ;;  %v2628_v33 = vsel %vm3303_vm2, %v934_v40, %v936_v54  ;;  %v2630_v36 = vsel %vm853_vm5, %v806_v49, 0.0  ;;  %v724_v45 = vor.u32 1.1754944e-38, %v723_v53  ;;  %v808_v47 = vmul.f32 %v710_v39, %v2347_v27  ;;  %v1889_v39 = vld [vmem:[%s3239_s2 + $0x58] sm:$0xff] }
  0x48   : > { %vm2635_vm14 = vmor %vm3304_vm0, %vm718_vm9  ;;  %vm3307_vm4 = vcmask 130048   ;;  %v2642_v48 = vsel %vm869_vm7, %v807_v29, 0.0  ;;  %v938_v52 = vrot.slane %v2630_v36, 1  ;;  %v716_v55 = vadd.f32 %v2044_v1, %v715_v51  ;;  %v1909_v29 = vld [vmem:[%s3239_s2 + $0x78] sm:$0xff] }
  0x49   : > { %1844 = vmatmul.msk.f32.vlgmr.msra.gmra.mxu1 %vm3307_vm4, %v2628_v33  ;;  %vm722_vm6 = vcmp.eq.f32.partialorder %v721_v38, 8.507059e+37  ;;  %v2046_v42 = vpop.eup %2045  ;;  %v940_v56 = vrot.slane %v2642_v48, 1  ;;  %2047 = vrcp.f32 %v2541_v20  ;;  %v1834_v53 = vmul.f32 -1.442695, %v2418_v63  ;;  %vm3308_vm9 = vmmov %vm3303_vm2 }
  0x4a   : > { %v720_v27 = vsel %vm2635_vm14, %v2044_v1, %v716_v55  ;;  %v2654_v59 = vsel %vm2621_vm10, %v808_v47, 0.0  ;;  %v608_v60 = vmul.f32 %v2046_v42, %v2528_v0  ;;  %vm826_vm1 = vcmp.ge.s32.totalorder %v2355_v31, 1  ;;  %vm871_vm12 = vmand %vm2585_vm15, %vm863_vm3  ;;  %1292 = vmatpush.msra.mxu1 %v1889_v39  ;;  %v1888_v39 = vld [vmem:[%s3239_s2 + $0x50] sm:$0xff] }
  0x4b   : > { %v2659_v7 = vsel %vm3308_vm9, %v938_v52, %v940_v56  ;;  %v725_v38 = vsel %vm722_vm6, %v724_v45, %v720_v27  ;;  %vm612_vm8 = vweird.f32 %v2528_v0  ;;  %v618_v61 = vand.u32 2147483648, %v2528_v0  ;;  %vm3309_vm13 = vmmov %vm3307_vm4 }
  0x4c   : > { %1846 = vmatmul.msk.f32.vlgmr.msra.gmra.mxu2 %vm3309_vm13, %v2659_v7  ;;  %v809_v46 = vmul.f32 %v725_v38, %v2350_v28  ;;  %v609_v1 = vsub.f32 1.0, %v608_v60  ;;  %vm613_vm5 = vweird.f32 %v2046_v42  ;;  %v616_v6 = vand.u32 2147483647, %v2528_v0  ;;  %vm3310_vm7 = vmmov %vm3303_vm2  ;;  %v1879_v28 = vld [vmem:[%s3239_s2 + $0x48] sm:$0xff]  ;;  %1293 = vmatpush.msra.mxu1 %v1888_v39 }
  0x4d   : > { %v942_v10 = vrot.slane %v2654_v59, 1  ;;  %v2673_v11 = vsel %vm3310_vm7, %v936_v54, %v938_v52  ;;  %vm833_vm15 = vcmp.lt.s32.totalorder %v2355_v31, 17  ;;  %2049 = vpow2.f32 %v1834_v53  ;;  %1232 = vmatpush.msrb.mxu0 %v1879_v28  ;;  %vm2694_vm11 = vmor %vm612_vm8, %vm613_vm5  ;;  %1349 = vmatpush.msra.mxu2 %v1899_v21 }
  0x4e   : > { %v2682_v19 = vsel %vm871_vm12, %v809_v46, 0.0  ;;  %v610_v8 = vmul.f32 %v2046_v42, %v609_v1  ;;  %v619_v5 = vor.u32 1.1754944e-38, %v618_v61  ;;  %vm3313_vm10 = vmmov %vm3307_vm4  ;;  %vm617_vm0 = vcmp.eq.f32.partialorder %v616_v6, 8.507059e+37  ;;  %v1919_v46 = vld [vmem:[%s3239_s2 + $0x88] sm:$0xff] }
  0x4f   : > { %v2048_v23 = vpop.eup %2047  ;;  %v944_v24 = vrot.slane %v2682_v19, 1  ;;  %v2701_v12 = vsel %vm3303_vm2, %v940_v56, %v942_v10  ;;  %vm2708_vm14 = vmand %vm826_vm1, %vm833_vm15  ;;  %vm627_vm6 = vweird.f32 %v2541_v20  ;;  %v633_v9 = vand.u32 2147483648, %v2541_v20 }
  0x50   : > { %v611_v57 = vadd.f32 %v2046_v42, %v610_v8  ;;  %v623_v25 = vmul.f32 %v2048_v23, %v2541_v20  ;;  %vm3316_vm4 = vmmov %vm3303_vm2  ;;  %vm628_vm9 = vweird.f32 %v2048_v23  ;;  %v631_v32 = vand.u32 2147483647, %v2541_v20  ;;  %v1878_v20 = vld [vmem:[%s3239_s2 + $0x40] sm:$0xff] }
  0x51   : > { %1845 = vmatmul.msk.f32.gmra.mxu1 %vm3313_vm10, %v2673_v11  ;;  %v2715_v26 = vsel %vm3316_vm4, %v942_v10, %v944_v24  ;;  %vm3317_vm12 = vmmov %vm3313_vm10  ;;  %vm3318_vm1 = vcmp.ge.s32.totalorder %v2364_v34, 1  ;;  %v634_v22 = vor.u32 1.1754944e-38, %v633_v9  ;;  %1233 = vmatpush.msrb.mxu0 %v1878_v20  ;;  %v820_v56 = vadd.s32 4, %v2355_v31 }
  0x52   : > { %1848 = vmatmul.msk.f32.vlgmr.msra.gmra.mxu3 %vm3317_vm12, %v2715_v26  ;;  %v615_v14 = vsel %vm2694_vm11, %v2046_v42, %v611_v57  ;;  %v624_v16 = vsub.f32 1.0, %v623_v25  ;;  %vm849_vm8 = vmand %vm2708_vm14, %vm3318_vm1  ;;  %vm632_vm7 = vcmp.eq.f32.partialorder %v631_v32, 8.507059e+37  ;;  %v1070_v13 = vrot.slane %v2577_v58, 2  ;;  %v517_v57 = vld [vmem:[%s2362_s26 + $0x8] sm:$0xff] }
  0x53   : > { %v2050_v15 = vpop.eup %2049  ;;  %v620_v30 = vsel %vm617_vm0, %v619_v5, %v615_v14  ;;  %vm3319_vm13 = vmmov %vm3313_vm10  ;;  %1410 = vmatpush.msra.mxu3 %v1909_v29  ;;  %v535_v0 = vmul.f32 %v2307_v2, %v517_v57  ;;  %v1908_v29 = vld [vmem:[%s3239_s2 + $0x70] sm:$0xff] }
  0x54   : > { %1847 = vmatmul.msk.f32.gmra.mxu2 %vm3319_vm13, %v2701_v12  ;;  %v625_v41 = vmul.f32 %v2048_v23, %v624_v16  ;;  %vm2730_vm5 = vmor %vm627_vm6, %vm628_vm9  ;;  %v802_v44 = vmul.f32 %v620_v30, %v2367_v35  ;;  %v602_v49 = vadd.f32 1.0, %v2050_v15  ;;  %vm830_vm6 = vcmp.ge.s32.totalorder %v820_v56, 1  ;;  %v1898_v30 = vld [vmem:[%s3239_s2 + $0x60] sm:$0xff] }
  0x55   : > { %vm3322_vm15 = vmmov %vm3313_vm10  ;;  %vm1066_vm10 = vcmask 1045504   ;;  %vm837_vm9 = vcmp.lt.s32.totalorder %v820_v56, 17  ;;  %v2786_v14 = vadd.f32 %v2316_v3, %v535_v0  ;;  %1350 = vmatpush.msra.mxu2 %v1898_v30  ;;  %1411 = vmatpush.msra.mxu3 %v1908_v29 }
  0x56   : > { %v626_v51 = vadd.f32 %v2048_v23, %v625_v41  ;;  %2051 = vrcp.f32 %v602_v49  ;;  %v903_v35 = vsel %vm849_vm8, %v802_v44, 0.0  ;;  %vm865_vm11 = vmand %vm2708_vm14, %vm863_vm3  ;;  %vm732_vm2 = vweird.f32 %v602_v49  ;;  %v518_v41 = vld [vmem:[%s2362_s26 + $0x10] sm:$0xff] }
  0x57   : > { %v931_v47 = vrot.slane %v903_v35, 1  ;;  %v1067_v52 = vrot.slane %v903_v35, 2  ;;  %v736_v38 = vand.u32 2147483647, %v602_v49  ;;  %v738_v61 = vand.u32 2147483648, %v602_v49  ;;  %vm3323_vm0 = vmmov %vm3316_vm4 }
  0x58   : > { %v630_v17 = vsel %vm2730_vm5, %v2048_v23, %v626_v51  ;;  %vm3324_vm4 = vmmov %vm3317_vm12  ;;  %v536_v54 = vmul.f32 %v2307_v2, %v518_v41 }
  0x59   : > { %1850 = vmatmul.msk.f32.vlgmr.msrb.gmra.mxu1 %vm3322_vm15, %v903_v35  ;;  %v635_v18 = vsel %vm632_vm7, %v634_v22, %v630_v17  ;;  %vm3325_vm12 = vmmov %vm3324_vm4  ;;  %v739_v28 = vor.u32 1.1754944e-38, %v738_v61  ;;  %vm737_vm13 = vcmp.eq.f32.partialorder %v736_v38, 8.507059e+37  ;;  %vm3330_vm15 = vcmp.ge.s32.totalorder %v2364_v34, 1 }
  0x5a   : > { %v803_v45 = vmul.f32 %v635_v18, %v2373_v37  ;;  %vm3326_vm1 = vmmov %vm3324_vm4  ;;  %v2815_v44 = vadd.f32 %v2316_v3, %v536_v54  ;;  %v1080_v61 = vrot.slane %v2682_v19, 2  ;;  %v519_v54 = vld [vmem:[%s2362_s26 + $0x18] sm:$0xff] }
  0x5b   : > { %vm2763_vm5 = vmand %vm830_vm6, %vm837_vm9 }
  0x5c   : > { %v2052_v55 = vpop.eup %2051  ;;  %v904_v42 = vsel %vm865_vm11, %v803_v45, 0.0  ;;  %vm3329_vm7 = vmmov %vm3323_vm0  ;;  %v1836_v22 = vmul.f32 -1.442695, %v2815_v44 }
  0x5d   : > { %v932_v53 = vrot.slane %v904_v42, 1  ;;  %v728_v27 = vmul.f32 %v2052_v55, %v602_v49  ;;  %v1068_v60 = vrot.slane %v904_v42, 2  ;;  %vm733_vm14 = vweird.f32 %v2052_v55  ;;  %vm857_vm11 = vmand %vm2763_vm5, %vm3330_vm15 }
  0x5e   : > { %vm734_vm8 = vmor %vm732_vm2, %vm733_vm14 }
  0x5f   : > { %v933_v1 = vsel %vm3323_vm0, %v931_v47, %v932_v53  ;;  %v729_v37 = vsub.f32 1.0, %v728_v27  ;;  %v1069_v6 = vsel %vm1066_vm10, %v1067_v52, %v1068_v60  ;;  %v935_v23 = vsel %vm3329_vm7, %v932_v53, %v934_v40  ;;  %vm3331_vm2 = vmmov %vm3326_vm1 }
  0x60   : > { %1842 = vmatmul.msk.f32.vlgmr.msra.gmra.mxu0 %vm3324_vm4, %v933_v1  ;;  %1860 = vmatmul.msk.f32.vlgmr.msrb.gmra.mxu2 %vm3325_vm12, %v1069_v6  ;;  %v1071_v4 = vsel %vm1066_vm10, %v1068_v60, %v1070_v13  ;;  %vm3332_vm0 = vmmov %vm3326_vm1  ;;  %v1072_v40 = vrot.slane %v2592_v62, 2 }
  0x61   : > { %v730_v10 = vmul.f32 %v2052_v55, %v729_v37  ;;  %1851 = vmatmul.msk.f32.gmra.mxu1 %vm3326_vm1, %v904_v42  ;;  %1470 = vmatpush.msra.mxu0 %v1919_v46  ;;  %vm3333_vm14 = vmmov %vm3332_vm0 }
  0x62   : > { %vm3334_vm4 = vmmov %vm3329_vm7  ;;  %v2800_v15 = vsel %vm1066_vm10, %v1070_v13, %v1072_v40 }
  0x63   : > { %v731_v8 = vadd.f32 %v2052_v55, %v730_v10  ;;  %vm3335_vm6 = vmmov %vm3332_vm0 }
  0x64   : > { %vm3336_vm9 = vmmov %vm3332_vm0 }
  0x65   : > { %v735_v21 = vsel %vm734_vm8, %v2052_v55, %v731_v8  ;;  %vm3337_vm12 = vmmov %vm3332_vm0 }
  0x66   : > { %v740_v5 = vsel %vm737_vm13, %v739_v28, %v735_v21  ;;  %vm3338_vm1 = vmmov %vm3332_vm0 }
  0x67   : > { %v810_v25 = vmul.f32 %v740_v5, %v2418_v63  ;;  %v1835_v63 = vmul.f32 -1.442695, %v2786_v14  ;;  %vm3339_vm8 = vmmov %vm3332_vm0 }
  0x68   : > { %1843 = vmatmul.msk.f32.gmra.mxu0 %vm3331_vm2, %v935_v23  ;;  %1861 = vmatmul.msk.f32.gmra.mxu2 %vm3332_vm0, %v1071_v4  ;;  %vm3340_vm13 = vmmov %vm3332_vm0  ;;  %v821_v23 = vadd.s32 5, %v2355_v31 }
  0x69   : > { %v2780_v9 = vsel %vm857_vm11, %v810_v25, 0.0  ;;  %1852 = vmatmul.msk.f32.gmra.mxu1 %vm3333_vm14, %v2577_v58  ;;  %2053 = vpow2.f32 %v1835_v63  ;;  %vm3341_vm7 = vmmov %vm3332_vm0 }
  0x6a   : > { %v946_v16 = vrot.slane %v2780_v9, 1  ;;  %2055 = vpow2.f32 %v1836_v22  ;;  %vm3342_vm15 = vmmov %vm3332_vm0  ;;  %v1082_v21 = vrot.slane %v2780_v9, 2  ;;  %v520_v22 = vld [vmem:[%s2362_s26 + $0x20] sm:$0xff]  ;;  %s1819_s26 = sshll.u32 %s3415_s11, 1 }
  0x6b   : > { %vm3343_vm11 = vmmov %vm3332_vm0  ;;  %s493_s14 = sadd.s32 %s1820_s21, %s1819_s26 }
  0x6c   : > { %v2795_v32 = vsel %vm3334_vm4, %v944_v24, %v946_v16  ;;  %v1074_v24 = vrot.slane %v2630_v36, 2  ;;  %vm3344_vm2 = vmmov %vm3332_vm0  ;;  %v2886_v25 = vsel %vm1066_vm10, %v1080_v61, %v1082_v21  ;;  %s1821_s19 = sshll.u32 %s493_s14, 3 }
  0x6d   : > { %1849 = vmatmul.msk.f32.gmra.mxu3 %vm3335_vm6, %v2795_v32  ;;  %vm3345_vm14 = vmmov %vm3332_vm0  ;;  %s3074_s13 = scalar_lea.vmem %s3243_s6, %s1821_s19  ;;  %s3086_s29 = scalar_lea.vmem %s3244_s7, %s1821_s19 }
  0x6e   : > { %vm3346_vm4 = vmmov %vm3332_vm0 }
  0x6f   : > { %v2054_v49 = vpop.eup %2053 }
  0x70   : > { %1880 = vmatmul.msk.f32.vlgmr.msrb.gmra.mxu0 %vm3336_vm9, %v2628_v33  ;;  %1862 = vmatmul.msk.f32.gmra.mxu2 %vm3337_vm12, %v2800_v15  ;;  %v603_v20 = vadd.f32 1.0, %v2054_v49  ;;  %v2821_v33 = vsel %vm1066_vm10, %v1072_v40, %v1074_v24  ;;  %v2056_v51 = vpop.eup %2055  ;;  %vm3347_vm12 = vmmov %vm3332_vm0 }
  0x71   : > { %1853 = vmatmul.msk.f32.gmra.mxu1 %vm3338_vm1, %v2592_v62  ;;  %v604_v17 = vadd.f32 1.0, %v2056_v51  ;;  %vm3348_vm1 = vmmov %vm3332_vm0 }
  0x72   : > { %2057 = vrcp.f32 %v603_v20  ;;  %vm747_vm6 = vweird.f32 %v603_v20  ;;  %v753_v53 = vand.u32 2147483648, %v603_v20  ;;  %v751_v60 = vand.u32 2147483647, %v603_v20 }
  0x73   : > { %2059 = vrcp.f32 %v604_v17  ;;  %v768_v13 = vand.u32 2147483648, %v604_v17  ;;  %v766_v8 = vand.u32 2147483647, %v604_v17 }
  0x74   : > { %v754_v46 = vor.u32 1.1754944e-38, %v753_v53 }
  0x75   : > { %1870 = vmatmul.msk.f32.vlgmr.msrb.gmra.mxu3 %vm3339_vm8, %v2577_v58  ;;  %v1076_v58 = vrot.slane %v2642_v48, 2  ;;  %vm3349_vm8 = vmmov %vm3332_vm0  ;;  %v769_v5 = vor.u32 1.1754944e-38, %v768_v13 }
  0x77   : > { %v2839_v18 = vsel %vm1066_vm10, %v1074_v24, %v1076_v58 }
  0x78   : > { %1881 = vmatmul.msk.f32.gmra.mxu0 %vm3340_vm13, %v2673_v11  ;;  %1863 = vmatmul.msk.f32.gmra.mxu2 %vm3341_vm7, %v2821_v33  ;;  %v2058_v35 = vpop.eup %2057  ;;  %v1918_v11 = vld [vmem:[%s3239_s2 + $0x80] sm:$0xff]  ;;  %vm752_vm7 = vcmp.eq.f32.partialorder %v751_v60, 8.507059e+37 }
  0x79   : > { %1854 = vmatmul.msk.f32.gmra.mxu1 %vm3342_vm15, %v2630_v36  ;;  %v743_v45 = vmul.f32 %v2058_v35, %v603_v20  ;;  %1471 = vmatpush.msra.mxu0 %v1918_v11  ;;  %v2060_v52 = vpop.eup %2059  ;;  %vm748_vm9 = vweird.f32 %v2058_v35  ;;  %vm3350_vm15 = vmmov %vm3332_vm0 }
  0x7a   : > { %v758_v56 = vmul.f32 %v2060_v52, %v604_v17  ;;  %vm749_vm13 = vmor %vm747_vm6, %vm748_vm9 }
  0x7b   : > { %v744_v47 = vsub.f32 1.0, %v743_v45  ;;  %vm873_vm9 = vmand %vm2763_vm5, %vm863_vm3 }
  0x7c   : > { %v759_v38 = vsub.f32 1.0, %v758_v56  ;;  %vm3355_vm5 = vmmov %vm3332_vm0 }
  0x7d   : > { %1871 = vmatmul.msk.f32.gmra.mxu3 %vm3343_vm11, %v2592_v62  ;;  %v1078_v62 = vrot.slane %v2654_v59, 2  ;;  %v745_v55 = vmul.f32 %v2058_v35, %v744_v47  ;;  %vm762_vm11 = vweird.f32 %v604_v17 }
  0x7e   : > { %v760_v37 = vmul.f32 %v2060_v52, %v759_v38 }
  0x7f   : > { %v2854_v42 = vsel %vm1066_vm10, %v1076_v58, %v1078_v62  ;;  %v746_v27 = vadd.f32 %v2058_v35, %v745_v55  ;;  %v2866_v6 = vsel %vm1066_vm10, %v1078_v62, %v1080_v61  ;;  %v822_v61 = vadd.s32 6, %v2355_v31 }
  0x80   : > { %1882 = vmatmul.msk.f32.gmra.mxu0 %vm3344_vm2, %v2659_v7  ;;  %1864 = vmatmul.msk.f32.gmra.mxu2 %vm3332_vm0, %v2839_v18  ;;  %vm763_vm2 = vweird.f32 %v2060_v52  ;;  %v761_v28 = vadd.f32 %v2060_v52, %v760_v37 }
  0x81   : > { %1855 = vmatmul.msk.f32.gmra.mxu1 %vm3345_vm14, %v2642_v48  ;;  %v750_v1 = vsel %vm749_vm13, %v2058_v35, %v746_v27  ;;  %vm3351_vm14 = vmmov %vm3332_vm0  ;;  %vm838_vm13 = vcmp.lt.s32.totalorder %v821_v23, 17 }
  0x82   : > { %v755_v10 = vsel %vm752_vm7, %v754_v46, %v750_v1  ;;  %vm764_vm6 = vmor %vm762_vm11, %vm763_vm2  ;;  %vm3359_vm2 = vcmp.ge.s32.totalorder %v2364_v34, 1 }
  0x83   : > { %v811_v4 = vmul.f32 %v755_v10, %v2786_v14  ;;  %v765_v57 = vsel %vm764_vm6, %v2060_v52, %v761_v28  ;;  %vm3354_vm7 = vmmov %vm3332_vm0 }
  0x84   : > { %vm3358_vm11 = vmmov %vm3332_vm0 }
  0x85   : > { %1872 = vmatmul.msk.f32.gmra.mxu3 %vm3346_vm4, %v2630_v36  ;;  %vm3352_vm4 = vmmov %vm3332_vm0  ;;  %v2888_v0 = vsel %vm873_vm9, %v811_v4, 0.0 }
  0x86   : > { %v1210_v14 = vrot.slane %v2888_v0, 1  ;;  %v1270_v58 = vrot.slane %v2888_v0, 2 }
  0x88   : > { %1883 = vmatmul.msk.f32.gmra.mxu0 %vm3347_vm12, %v2701_v12  ;;  %1865 = vmatmul.msk.f32.gmra.mxu2 %vm3348_vm1, %v2854_v42  ;;  %vm767_vm12 = vcmp.eq.f32.partialorder %v766_v8, 8.507059e+37  ;;  %vm3353_vm1 = vmmov %vm3332_vm0  ;;  %v1271_v17 = vsel %vm1066_vm10, %v1082_v21, %v1270_v58 }
  0x89   : > { %1856 = vmatmul.msk.f32.gmra.mxu1 %vm3349_vm8, %v2654_v59  ;;  %vm831_vm8 = vcmp.ge.s32.totalorder %v821_v23, 1  ;;  %v770_v40 = vsel %vm767_vm12, %v769_v5, %v765_v57  ;;  %vm3362_vm6 = vmmov %vm3353_vm1 }
  0x8a   : > { %v812_v63 = vmul.f32 %v770_v40, %v2815_v44  ;;  %vm3363_vm9 = vmmov %vm3353_vm1 }
  0x8b   : > { %vm3364_vm12 = vmmov %vm3353_vm1 }
  0x8d   : > { %1873 = vmatmul.msk.f32.gmra.mxu3 %vm3350_vm15, %v2642_v48  ;;  %vm2894_vm15 = vmand %vm831_vm8, %vm838_vm13 }
  0x8e   : > { %vm3366_vm13 = vmmov %vm3353_vm1 }
  0x90   : > { %1884 = vmatmul.msk.f32.gmra.mxu0 %vm3332_vm0, %v2715_v26  ;;  %1866 = vmatmul.msk.f32.gmra.mxu2 %vm3351_vm14, %v2866_v6  ;;  %vm859_vm0 = vmand %vm2894_vm15, %vm3359_vm2 }
  0x91   : > { %1857 = vmatmul.msk.f32.gmra.mxu1 %vm3352_vm4, %v2682_v19  ;;  %vm3360_vm14 = vmmov %vm3353_vm1  ;;  %vm3361_vm4 = vcmask 1046528   ;;  %v2913_v41 = vsel %vm859_vm0, %v812_v63, 0.0 }
  0x92   : > { %v2911_v30 = vsel %vm3361_vm4, %v946_v16, %v1210_v14  ;;  %v1212_v24 = vrot.slane %v2913_v41, 1  ;;  %vm3365_vm8 = vmmov %vm3361_vm4  ;;  %v1272_v62 = vrot.slane %v2913_v41, 2 }
  0x93   : > { %vm3370_vm2 = vmmov %vm3353_vm1 }
  0x94   : > { %v2933_v49 = vsel %vm3365_vm8, %v1210_v14, %v1212_v24  ;;  %vm3371_vm0 = vmmov %vm3353_vm1  ;;  %v1273_v53 = vsel %vm1066_vm10, %v1270_v58, %v1272_v62 }
  0x95   : > { %1874 = vmatmul.msk.f32.gmra.mxu3 %vm3353_vm1, %v2654_v59  ;;  %vm3373_vm4 = vmmov %vm3371_vm0 }
  0x96   : > { %vm3378_vm8 = vmmov %vm3371_vm0 }
  0x98   : > { %1885 = vmatmul.msk.f32.gmra.mxu0 %vm3354_vm7, %v2795_v32  ;;  %1867 = vmatmul.msk.f32.gmra.mxu2 %vm3355_vm5, %v2886_v25  ;;  %vm3367_vm7 = vmmov %vm3353_vm1 }
  0x99   : > { %1890 = vmatmul.msk.f32.vlgmr.msra.gmra.mxu1 %vm3358_vm11, %v2800_v15  ;;  %v537_v15 = vmul.f32 %v2307_v2, %v519_v54  ;;  %vm3368_vm5 = vmmov %vm3353_vm1 }
  0x9a   : > { %vm3369_vm11 = vmmov %vm3353_vm1 }
  0x9b   : > { %v2925_v44 = vadd.f32 %v2316_v3, %v537_v15 }
  0x9d   : > { %1875 = vmatmul.msk.f32.gmra.mxu3 %vm3360_vm14, %v2682_v19  ;;  %v1837_v16 = vmul.f32 -1.442695, %v2925_v44  ;;  %vm3372_vm14 = vmmov %vm3371_vm0 }
  0x9f   : > { %2061 = vpow2.f32 %v1837_v16 }
  0xa0   : > { %1886 = vmatmul.msk.f32.gmra.mxu0 %vm3362_vm6, %v2911_v30  ;;  %1900 = vmatmul.msk.f32.vlgmr.msra.gmra.mxu2 %vm3363_vm9, %v2630_v36  ;;  %v538_v36 = vmul.f32 %v2307_v2, %v520_v22  ;;  %vm3374_vm6 = vmmov %vm3371_vm0 }
  0xa1   : > { %1891 = vmatmul.msk.f32.gmra.mxu1 %vm3364_vm12, %v2821_v33  ;;  %vm3375_vm9 = vmmov %vm3371_vm0 }
  0xa2   : > { %v2944_v20 = vadd.f32 %v2316_v3, %v538_v36  ;;  %vm3376_vm12 = vmmov %vm3371_vm0 }
  0xa4   : > { %v1838_v33 = vmul.f32 -1.442695, %v2944_v20 }
  0xa5   : > { %1876 = vmatmul.msk.f32.gmra.mxu3 %vm3353_vm1, %v2780_v9  ;;  %v2062_v29 = vpop.eup %2061  ;;  %vm3377_vm1 = vmmov %vm3371_vm0 }
  0xa6   : > { %v605_v2 = vadd.f32 1.0, %v2062_v29  ;;  %2063 = vpow2.f32 %v1838_v33 }
  0xa8   : > { %1887 = vmatmul.msk.f32.gmra.mxu0 %vm3366_vm13, %v2933_v49  ;;  %1901 = vmatmul.msk.f32.gmra.mxu2 %vm3367_vm7, %v2642_v48  ;;  %2065 = vrcp.f32 %v605_v2  ;;  %vm3379_vm13 = vmmov %vm3371_vm0  ;;  %v781_v11 = vand.u32 2147483647, %v605_v2 }
  0xa9   : > { %1892 = vmatmul.msk.f32.gmra.mxu1 %vm3368_vm5, %v2839_v18  ;;  %vm3380_vm7 = vmmov %vm3371_vm0 }
  0xaa   : > { %vm3381_vm5 = vmmov %vm3371_vm0 }
  0xac   : > { %v2064_v3 = vpop.eup %2063 }
  0xad   : > { %1877 = vmatmul.msk.f32.gmra.mxu3 %vm3369_vm11, %v2888_v0  ;;  %v606_v48 = vadd.f32 1.0, %v2064_v3  ;;  %vm777_vm11 = vweird.f32 %v605_v2 }
  0xaf   : > { %2067 = vrcp.f32 %v606_v48  ;;  %v796_v60 = vand.u32 2147483647, %v606_v48 }
  0xb0   : > { %1920 = vmatmul.msk.f32.vlgmr.msra.gmra.mxu0 %vm3370_vm2, %v2839_v18  ;;  %1902 = vmatmul.msk.f32.gmra.mxu2 %vm3371_vm0, %v2654_v59  ;;  %v2066_v59 = vpop.eup %2065  ;;  %v783_v18 = vand.u32 2147483648, %v605_v2 }
  0xb1   : > { %1893 = vmatmul.msk.f32.gmra.mxu1 %vm3372_vm14, %v2854_v42  ;;  %v773_v39 = vmul.f32 %v2066_v59, %v605_v2  ;;  %vm778_vm2 = vweird.f32 %v2066_v59  ;;  %vm3382_vm14 = vmmov %vm3371_vm0 }
  0xb2   : > { %v784_v47 = vor.u32 1.1754944e-38, %v783_v18 }
  0xb5   : > { %1910 = vmatmul.msk.f32.vlgmr.msra.gmra.mxu3 %vm3373_vm4, %v2659_v7  ;;  %v774_v7 = vsub.f32 1.0, %v773_v39  ;;  %vm3383_vm4 = vmmov %vm3371_vm0 }
  0xb8   : > { %1921 = vmatmul.msk.f32.gmra.mxu0 %vm3374_vm6, %v2854_v42  ;;  %1903 = vmatmul.msk.f32.gmra.mxu2 %vm3375_vm9, %v2682_v19  ;;  %v2068_v19 = vpop.eup %2067  ;;  %vm779_vm6 = vmor %vm777_vm11, %vm778_vm2 }
  0xb9   : > { %1894 = vmatmul.msk.f32.gmra.mxu1 %vm3376_vm12, %v2866_v6  ;;  %v788_v35 = vmul.f32 %v2068_v19, %v606_v48  ;;  %vm3384_vm9 = vmmov %vm3371_vm0  ;;  %vm782_vm12 = vcmp.eq.f32.partialorder %v781_v11, 8.507059e+37 }
  0xba   : > { %vm875_vm2 = vmand %vm2894_vm15, %vm863_vm3  ;;  %vm3391_vm15 = vcmp.ge.s32.totalorder %v2364_v34, 1 }
  0xbb   : > { %v789_v45 = vsub.f32 1.0, %v788_v35  ;;  %vm3390_vm3 = vmmov %vm3371_vm0 }
  0xbd   : > { %1911 = vmatmul.msk.f32.gmra.mxu3 %vm3377_vm1, %v2701_v12  ;;  %v775_v12 = vmul.f32 %v2066_v59, %v774_v7  ;;  %vm3385_vm1 = vmmov %vm3371_vm0 }
  0xc0   : > { %1922 = vmatmul.msk.f32.gmra.mxu0 %vm3378_vm8, %v2866_v6  ;;  %1904 = vmatmul.msk.f32.gmra.mxu2 %vm3379_vm13, %v2780_v9  ;;  %v790_v9 = vmul.f32 %v2068_v19, %v789_v45  ;;  %vm3386_vm8 = vmmov %vm3371_vm0  ;;  %vm792_vm13 = vweird.f32 %v606_v48 }
  0xc1   : > { %1895 = vmatmul.msk.f32.gmra.mxu1 %vm3380_vm7, %v2886_v25  ;;  %vm793_vm7 = vweird.f32 %v2068_v19 }
  0xc2   : > { %v791_v27 = vadd.f32 %v2068_v19, %v790_v9  ;;  %vm794_vm11 = vmor %vm792_vm13, %vm793_vm7  ;;  %vm3393_vm7 = vcmask 1046528  }
  0xc3   : > { %vm3392_vm13 = vmmov %vm3371_vm0 }
  0xc4   : > { %v795_v37 = vsel %vm794_vm11, %v2068_v19, %v791_v27  ;;  %vm3395_vm11 = vmmov %vm3371_vm0 }
  0xc5   : > { %1912 = vmatmul.msk.f32.gmra.mxu3 %vm3381_vm5, %v2715_v26  ;;  %v776_v26 = vadd.f32 %v2066_v59, %v775_v12  ;;  %vm3387_vm5 = vmmov %vm3371_vm0 }
  0xc6   : > { %v2974_v51 = vpop.f32.mrf.mxu1 }
  0xc7   : > { %v780_v52 = vsel %vm779_vm6, %v2066_v59, %v776_v26  ;;  %vm839_vm6 = vcmp.lt.s32.totalorder %v822_v61, 17 }
  0xc8   : > { %1923 = vmatmul.msk.f32.gmra.mxu0 %vm3371_vm0, %v2886_v25  ;;  %1905 = vmatmul.msk.f32.gmra.mxu2 %vm3382_vm14, %v2888_v0  ;;  %v785_v56 = vsel %vm782_vm12, %v784_v47, %v780_v52  ;;  %vm797_vm14 = vcmp.eq.f32.partialorder %v796_v60, 8.507059e+37  ;;  %vm3389_vm12 = vmmov %vm3371_vm0 }
  0xc9   : > { %1896 = vmatmul.msk.f32.gmra.mxu1 %vm3383_vm4, %v1271_v17  ;;  %v813_v38 = vmul.f32 %v785_v56, %v2925_v44  ;;  %vm832_vm4 = vcmp.ge.s32.totalorder %v822_v61, 1 }
  0xcb   : > { %v914_v6 = vsel %vm875_vm2, %v813_v38, 0.0  ;;  %vm3396_vm2 = vmmov %vm3393_vm7 }
  0xcc   : > { %v1448_v10 = vrot.slane %v914_v6, 2  ;;  %v1388_v21 = vrot.slane %v914_v6, 1 }
  0xcd   : > { %1913 = vmatmul.msk.f32.gmra.mxu3 %vm3384_vm9, %v2795_v32  ;;  %v798_v32 = vand.u32 2147483648, %v606_v48  ;;  %vm3388_vm9 = vmmov %vm3371_vm0 }
  0xce   : > { %v2987_v55 = vpop.f32.mrf.mxu1  ;;  %v1449_v8 = vsel %vm1066_vm10, %v1272_v62, %v1448_v10  ;;  %v1389_v57 = vsel %vm3393_vm7, %v1212_v24, %v1388_v21 }
  0xcf   : > { %v2989_v42 = vpop.f32.mrf.mxu2  ;;  %v799_v46 = vor.u32 1.1754944e-38, %v798_v32 }
  0xd0   : > { %1924 = vmatmul.msk.f32.gmra.mxu0 %vm3385_vm1, %v1271_v17  ;;  %1906 = vmatmul.msk.f32.gmra.mxu2 %vm3386_vm8, %v2913_v41  ;;  %vm846_vm1 = vmand %vm832_vm4, %vm839_vm6 }
  0xd1   : > { %1897 = vmatmul.msk.f32.gmra.mxu1 %vm3387_vm5, %v1273_v53  ;;  %v800_v31 = vsel %vm797_vm14, %v799_v46, %v795_v37  ;;  %vm861_vm8 = vmand %vm846_vm1, %vm3391_vm15  ;;  %vm1535_vm14 = vcmask 189440  }
  0xd2   : > { %v814_v13 = vmul.f32 %v800_v31, %v2944_v20  ;;  %vm3394_vm5 = vmmov %vm3371_vm0 }
  0xd4   : > { %v915_v4 = vsel %vm861_vm8, %v814_v13, 0.0 }
  0xd5   : > { %1914 = vmatmul.msk.f32.gmra.mxu3 %vm3371_vm0, %v2911_v30  ;;  %v1450_v5 = vrot.slane %v915_v4, 2  ;;  %v3020_v34 = vpop.f32.mrf.mxu3  ;;  %v1390_v50 = vrot.slane %v915_v4, 1 }
  0xd6   : > { %v1039_v1 = vpop.f32.mrf.mxu1 }
  0xd7   : > { %v3006_v43 = vpop.f32.mrf.mxu2  ;;  %v1451_v40 = vsel %vm1066_vm10, %v1448_v10, %v1450_v5  ;;  %v1391_v63 = vsel %vm3396_vm2, %v1388_v21, %v1390_v50  ;;  %v3079_v5 = vld [vmem:[%s3240_s3] ss:$0 sm:$0xff]  ;;  %vm1533_vm10 = vcmask 195584  }
  0xd8   : > { %1925 = vmatmul.msk.f32.gmra.mxu0 %vm3388_vm9, %v1273_v53  ;;  %1907 = vmatmul.msk.f32.gmra.mxu2 %vm3389_vm12, %v914_v6 }
  0xdd   : > { %1915 = vmatmul.msk.f32.gmra.mxu3 %vm3390_vm3, %v2933_v49  ;;  %v982_v28 = vpop.f32.mrf.mxu0 }
  0xde   : > { %v1042_v23 = vpop.f32.mrf.mxu1  ;;  %v1040_v62 = vadd.f32 %v1039_v1, %v982_v28 }
  0xe0   : > { %1926 = vmatmul.msk.f32.gmra.mxu0 %vm3392_vm13, %v1449_v8 }
  0xe3   : > { %v1117_v25 = vpop.f32.mrf.mxu2 }
  0xe4   : > { %v1141_v9 = vadd.f32 %v1117_v25, %v1040_v62  ;;  %v1518_v62 = vld [vmem:[%s3074_s13 + $0x8] sm:$0x3] }
  0xe5   : > { %1916 = vmatmul.msk.f32.gmra.mxu3 %vm3394_vm5, %v1389_v57  ;;  %v985_v0 = vpop.f32.mrf.mxu0 }
  0xe6   : > { %v1045_v14 = vpop.f32.mrf.mxu1  ;;  %v1043_v60 = vadd.f32 %v1042_v23, %v985_v0  ;;  %v1517_v0 = vld [vmem:[%s3074_s13] sm:$0xff] }
  0xe7   : > { %v1046_v13 = vadd.f32 %v1045_v14, %v2974_v51 }
  0xe8   : > { %1927 = vmatmul.msk.f32.gmra.mxu0 %vm3395_vm11, %v1451_v40 }
  0xeb   : > { %v1120_v30 = vpop.f32.mrf.mxu2 }
  0xec   : > { %v1142_v46 = vadd.f32 %v1120_v30, %v1043_v60 }
  0xed   : > { %1917 = vmatmul.msk.f32.gmra.mxu3 %vm3371_vm0, %v1391_v63  ;;  %v1235_v41 = vpop.f32.mrf.mxu0 }
  0xee   : > { %v3027_v15 = vpop.f32.mrf.mxu1 }
  0xef   : > { %v1049_v63 = vadd.f32 %v3027_v15, %v2987_v55 }
  0xf0   : > { %v3025_v54 = vpop.f32.mrf.mxu3 }
  0xf3   : > { %v1123_v24 = vpop.f32.mrf.mxu2 }
  0xf4   : > { %v1143_v4 = vadd.f32 %v1123_v24, %v1046_v13 }
  0xf5   : > { %v1238_v44 = vpop.f32.mrf.mxu0 }
  0xf6   : > { %v3029_v49 = vpop.f32.mrf.mxu1 }
  0xf8   : > { %v1174_v16 = vpop.f32.mrf.mxu3 }
  0xf9   : > { %v1198_v53 = vadd.f32 %v1174_v16, %v1141_v9 }
  0xfb   : > { %v3031_v22 = vpop.f32.mrf.mxu2  ;;  %v1259_v61 = vadd.f32 %v1235_v41, %v1198_v53 }
  0xfc   : > { %v1144_v16 = vadd.f32 %v3031_v22, %v1049_v63  ;;  %v1521_v63 = vld [vmem:[%s3074_s13 + $0x20] sm:$0xff] }
  0xfd   : > { %v3033_v36 = vpop.f32.mrf.mxu0 }
  0xfe   : > { %v3037_v29 = vpop.f32.mrf.mxu1 }
 0x100   : > { %v1177_v20 = vpop.f32.mrf.mxu3 }
 0x101   : > { %v1199_v6 = vadd.f32 %v1177_v20, %v1142_v46 }
 0x103   : > { %v3035_v33 = vpop.f32.mrf.mxu2  ;;  %v1260_v21 = vadd.f32 %v1238_v44, %v1199_v6 }
 0x105   : > { %v3039_v2 = vpop.f32.mrf.mxu0 }
 0x106   : > { %v3045_v39 = vpop.f32.mrf.mxu1 }
 0x108   : > { %v1180_v3 = vpop.f32.mrf.mxu3 }
 0x109   : > { %v1200_v51 = vadd.f32 %v1180_v3, %v1143_v4  ;;  %v1520_v4 = vld [vmem:[%s3074_s13 + $0x18] sm:$0x3] }
 0x10b   : > { %v3041_v48 = vpop.f32.mrf.mxu2  ;;  %v1261_v44 = vadd.f32 %v3033_v36, %v1200_v51  ;;  %v1052_v36 = vadd.f32 %v3029_v49, %v2989_v42 }
 0x10d   : > { %v3043_v59 = vpop.f32.mrf.mxu0 }
 0x10e   : > { %v3053_v35 = vpop.f32.mrf.mxu1 }
 0x110   : > { %v1183_v7 = vpop.f32.mrf.mxu3 }
 0x111   : > { %v1201_v9 = vadd.f32 %v1183_v7, %v1144_v16 }
 0x113   : > { %v3047_v19 = vpop.f32.mrf.mxu2 }
 0x115   : > { %v3049_v58 = vpop.f32.mrf.mxu0 }
 0x116   : > { %v1295_v11 = vpop.f32.mrf.mxu1 }
 0x117   : > { %v1319_v37 = vadd.f32 %v1295_v11, %v1259_v61 }
 0x118   : > { %v3051_v12 = vpop.f32.mrf.mxu3 }
 0x11b   : > { %v3055_v17 = vpop.f32.mrf.mxu2 }
 0x11d   : > { %v3057_v18 = vpop.f32.mrf.mxu0 }
 0x11e   : > { %v1298_v56 = vpop.f32.mrf.mxu1 }
 0x11f   : > { %v1320_v57 = vadd.f32 %v1298_v56, %v1260_v21 }
 0x120   : > { %v3059_v26 = vpop.f32.mrf.mxu3 }
 0x123   : > { %v1352_v45 = vpop.f32.mrf.mxu2 }
 0x124   : > { %v1376_v1 = vadd.f32 %v1352_v45, %v1319_v37  ;;  %v1519_v37 = vld [vmem:[%s3074_s13 + $0x10] sm:$0xff] }
 0x125   : > { %v3061_v47 = vpop.f32.mrf.mxu0 }
 0x126   : > { %v1301_v10 = vpop.f32.mrf.mxu1 }
 0x127   : > { %v1321_v11 = vadd.f32 %v1301_v10, %v1261_v44 }
 0x128   : > { %v3063_v52 = vpop.f32.mrf.mxu3 }
 0x12b   : > { %v1355_v27 = vpop.f32.mrf.mxu2 }
 0x12c   : > { %v1377_v50 = vadd.f32 %v1355_v27, %v1320_v57  ;;  %v1145_v27 = vadd.f32 %v3035_v33, %v1052_v36 }
 0x12d   : > { %v1473_v32 = vpop.f32.mrf.mxu0 }
 0x12e   : > { %v1304_v24 = vpop.f32.mrf.mxu1  ;;  %v1202_v42 = vadd.f32 %v3051_v12, %v1145_v27 }
 0x130   : > { %v3067_v38 = vpop.f32.mrf.mxu3  ;;  %v1263_v10 = vadd.f32 %v3043_v59, %v1202_v42 }
 0x133   : > { %v1358_v8 = vpop.f32.mrf.mxu2 }
 0x134   : > { %v1378_v15 = vadd.f32 %v1358_v8, %v1321_v11 }
 0x135   : > { %v1476_v31 = vpop.f32.mrf.mxu0 }
 0x136   : > { %v1307_v60 = vpop.f32.mrf.mxu1 }
 0x137   : > { %v1323_v12 = vadd.f32 %v1307_v60, %v1263_v10 }
 0x138   : > { %v1413_v28 = vpop.f32.mrf.mxu3 }
 0x139   : > { %v1437_v23 = vadd.f32 %v1413_v28, %v1376_v1 }
 0x13b   : > { %v1497_v25 = vadd.f32 %v1473_v32, %v1437_v23  ;;  %v1361_v3 = vpop.f32.mrf.mxu2  ;;  %v1262_v32 = vadd.f32 %v3039_v2, %v1201_v9  ;;  %v1055_v2 = vadd.f32 %v3037_v29, %v3006_v43  ;;  %v1522_v9 = vld [vmem:[%s3074_s13 + $0x28] sm:$0x3] }
 0x13d   : > { %v1509_v40 = vadd.f32 %v3079_v5, %v1497_v25  ;;  %v1479_v14 = vpop.f32.mrf.mxu0  ;;  %v1322_v61 = vadd.f32 %v1304_v24, %v1262_v32  ;;  %v1146_v13 = vadd.f32 %v3041_v48, %v1055_v2  ;;  %v1058_v48 = vadd.f32 %v3045_v39, %v3020_v34 }
 0x13e   : > { %v1310_v23 = vpop.f32.mrf.mxu1 }
 0x13f   : > { %v3090_v30 = vadd.f32 %v1517_v0, %v1509_v40  ;;  %v1379_v1 = vadd.f32 %v1361_v3, %v1322_v61  ;;  %v1203_v43 = vadd.f32 %v3059_v26, %v1146_v13  ;;  %v1147_v40 = vadd.f32 %v3047_v19, %v1058_v48 }
 0x140   : > { %v1416_v41 = vpop.f32.mrf.mxu3 }
 0x141   : > { %1534 = vst.msk [vmem:[%s3086_s29] sm:$0xff] %vm1533_vm10, %v3090_v30  ;;  %v1438_v20 = vadd.f32 %v1416_v41, %v1377_v50  ;;  %v1264_v51 = vadd.f32 %v3049_v58, %v1203_v43  ;;  %v1204_v24 = vadd.f32 %v3063_v52, %v1147_v40  ;;  %v1061_v58 = vadd.f32 %v3053_v35, %v3025_v54 }
 0x143   : > { %v1498_v45 = vadd.f32 %v1476_v31, %v1438_v20  ;;  %v1364_v6 = vpop.f32.mrf.mxu2  ;;  %v1324_v26 = vadd.f32 %v1310_v23, %v1264_v51  ;;  %v1265_v3 = vadd.f32 %v3057_v18, %v1204_v24  ;;  %v1148_v11 = vadd.f32 %v3055_v17, %v1061_v58 }
 0x144   : > { %v1380_v57 = vadd.f32 %v1364_v6, %v1323_v12 }
 0x145   : > { %v1510_v55 = vadd.f32 %v3079_v5, %v1498_v45  ;;  %v1482_v53 = vpop.f32.mrf.mxu0 }
 0x146   : > { %v1313_v44 = vpop.f32.mrf.mxu1 }
 0x147   : > { %v3101_v56 = vadd.f32 %v1518_v62, %v1510_v55  ;;  %v1325_v62 = vadd.f32 %v1313_v44, %v1265_v3  ;;  %v1205_v55 = vadd.f32 %v3067_v38, %v1148_v11  ;;  %v1523_v38 = vld [vmem:[%s3074_s13 + $0x30] sm:$0xff] }
 0x148   : > { %v1419_v22 = vpop.f32.mrf.mxu3 }
 0x149   : > { %1536 = vst.msk [vmem:[%s3086_s29 + $0x8] sm:$0x3] %vm1535_vm14, %v3101_v56  ;;  %v1439_v7 = vadd.f32 %v1419_v22, %v1378_v15  ;;  %v1266_v17 = vadd.f32 %v3061_v47, %v1205_v55  ;;  %v1524_v47 = vld [vmem:[%s3074_s13 + $0x38] sm:$0x3] }
 0x14b   : > { %v1499_v46 = vadd.f32 %v1479_v14, %v1439_v7  ;;  %v1367_v25 = vpop.f32.mrf.mxu2 }
 0x14c   : > { %v1381_v39 = vadd.f32 %v1367_v25, %v1324_v26 }
 0x14d   : > { %v1511_v49 = vadd.f32 %v3079_v5, %v1499_v46  ;;  %v1485_v8 = vpop.f32.mrf.mxu0 }
 0x14e   : > { %v1316_v22 = vpop.f32.mrf.mxu1 }
 0x14f   : > { %v3113_v33 = vadd.f32 %v1519_v37, %v1511_v49  ;;  %v1326_v27 = vadd.f32 %v1316_v22, %v1266_v17 }
 0x150   : > { %v1422_v31 = vpop.f32.mrf.mxu3 }
 0x151   : > { %1537 = vst.msk [vmem:[%s3086_s29 + $0x10] sm:$0xff] %vm1533_vm10, %v3113_v33  ;;  %v1440_v28 = vadd.f32 %v1422_v31, %v1379_v1 }
 0x153   : > { %v1500_v21 = vadd.f32 %v1482_v53, %v1440_v28  ;;  %v1370_v20 = vpop.f32.mrf.mxu2 }
 0x154   : > { %v1382_v54 = vadd.f32 %v1370_v20, %v1325_v62 }
 0x155   : > { %v1512_v29 = vadd.f32 %v3079_v5, %v1500_v21  ;;  %v1488_v41 = vpop.f32.mrf.mxu0 }
 0x157   : > { %v3125_v59 = vadd.f32 %v1520_v4, %v1512_v29 }
 0x158   : > { %v1425_v0 = vpop.f32.mrf.mxu3 }
 0x159   : > { %1538 = vst.msk [vmem:[%s3086_s29 + $0x18] sm:$0x3] %vm1535_vm14, %v3125_v59  ;;  %v1441_v50 = vadd.f32 %v1425_v0, %v1380_v57 }
 0x15b   : > { %v1501_v14 = vadd.f32 %v1485_v8, %v1441_v50  ;;  %v1373_v32 = vpop.f32.mrf.mxu2 }
 0x15c   : > { %v1383_v61 = vadd.f32 %v1373_v32, %v1326_v27 }
 0x15d   : > { %v1513_v34 = vadd.f32 %v3079_v5, %v1501_v14  ;;  %v1491_v35 = vpop.f32.mrf.mxu0 }
 0x15f   : > { %v1529_v19 = vadd.f32 %v1521_v63, %v1513_v34 }
 0x160   : > { %v1428_v16 = vpop.f32.mrf.mxu3 }
 0x161   : > { %1539 = vst.msk [vmem:[%s3086_s29 + $0x20] sm:$0xff] %vm1533_vm10, %v1529_v19  ;;  %v1442_v45 = vadd.f32 %v1428_v16, %v1381_v39 }
 0x163   : > { %v1502_v52 = vadd.f32 %v1488_v41, %v1442_v45 }
 0x165   : > { %v1514_v15 = vadd.f32 %v3079_v5, %v1502_v52  ;;  %v1494_v6 = vpop.f32.mrf.mxu0 }
 0x167   : > { %v1530_v36 = vadd.f32 %v1522_v9, %v1514_v15 }
 0x168   : > { %v1431_v53 = vpop.f32.mrf.mxu3 }
 0x169   : > { %1540 = vst.msk [vmem:[%s3086_s29 + $0x28] sm:$0x3] %vm1535_vm14, %v1530_v36  ;;  %v1443_v18 = vadd.f32 %v1431_v53, %v1382_v54 }
 0x16b   : > { %v1503_v7 = vadd.f32 %v1491_v35, %v1443_v18 }
 0x16d   : > { %v1515_v60 = vadd.f32 %v3079_v5, %v1503_v7 }
 0x16f   : > { %v1531_v46 = vadd.f32 %v1523_v38, %v1515_v60 }
 0x170   : > { %v1434_v37 = vpop.f32.mrf.mxu3 }
 0x171   : > { %1541 = vst.msk [vmem:[%s3086_s29 + $0x30] sm:$0xff] %vm1533_vm10, %v1531_v46  ;;  %v1444_v42 = vadd.f32 %v1434_v37, %v1383_v61 }
 0x173   : > { %v1504_v49 = vadd.f32 %v1494_v6, %v1444_v42 }
 0x175   : > { %v1516_v1 = vadd.f32 %v3079_v5, %v1504_v49  ;;  %1546 = sbr.rel (%p1928_p2) target bundleno = 380 (0x17c), region = 52 }
 0x177   : > { %v1532_v2 = vadd.f32 %v1524_v47, %v1516_v1 }
 0x179   : > { %1542 = vst.msk [vmem:[%s3086_s29 + $0x38] sm:$0x3] %vm1535_vm14, %v1532_v2 }
 0x17a   : > { %v2165_v31 = vmov 0.0  }
 0x17b   : > { %1547 = vst.msk [vmem:[%s3156_s16] sm:$0x3] %vm1535_vm14, %v2165_v31 }
 0x17c PF: > { %v1548_v10 = vsel %vm1533_vm10, %v3090_v30, 0.0  ;;  %v1549_v13 = vsel %vm1535_vm14, %v3101_v56, 0.0  ;;  %v1551_v5 = vsel %vm1533_vm10, %v3113_v33, 0.0  ;;  %v1553_v8 = vsel %vm1535_vm14, %v3125_v59, 0.0  ;;  %s1930_s30 = sshll.u32 %s2151_s9, 1  ;;  %s1630_s21 = sshll.u32 %s3156_s16, 4  ;;  %s1631_s21 = int_to_ptr.vmem [resolvable:$true] %s1630_s21 }
 0x17d   : > { %v1550_v28 = vadd.f32 %v1549_v13, %v1548_v10  ;;  %v1569_v12 = vmul.f32 %v3090_v30, %v3090_v30  ;;  %v1570_v21 = vmul.f32 %v3101_v56, %v3101_v56  ;;  %v1571_v4 = vmul.f32 %v3113_v33, %v3113_v33  ;;  %s1628_s26 = scalar_lea.hbm %s3245_s8, %s1930_s30  ;;  %s1614_s9 = scalar_lea.sflag [#allocation3], %s439_s15 }
 0x17e   : > { %v1572_v43 = vmul.f32 %v3125_v59, %v3125_v59  ;;  %v1555_v29 = vsel %vm1533_vm10, %v1529_v19, 0.0  ;;  %v1573_v57 = vmul.f32 %v1529_v19, %v1529_v19  ;;  %v1557_v56 = vsel %vm1535_vm14, %v1530_v36, 0.0  ;;  %s1632_s14 = sshll.u32 %s1628_s26, 4  ;;  %s2089_s11 = scalar_lea.hbm %s3245_s8, 4  ;;  %s1633_s14 = int_to_ptr.hbm [resolvable:$true] %s1632_s14 }
 0x17f   : > { %v1552_v23 = vadd.f32 %v1551_v5, %v1550_v28  ;;  %v1577_v25 = vsel %vm1533_vm10, %v1569_v12, 0.0  ;;  %v1578_v48 = vsel %vm1535_vm14, %v1570_v21, 0.0  ;;  %v1580_v30 = vsel %vm1533_vm10, %v1571_v4, 0.0  ;;  %s2083_s19 = sshra.s32 %s1633_s14, 4  ;;  %s2084_s19 = int_to_ptr.hbm [resolvable:$true] %s2083_s19 }
 0x180   : > { %v1579_v51 = vadd.f32 %v1578_v48, %v1577_v25  ;;  %v1574_v40 = vmul.f32 %v1530_v36, %v1530_v36  ;;  %v1582_v33 = vsel %vm1535_vm14, %v1572_v43, 0.0  ;;  %v1559_v59 = vsel %vm1533_vm10, %v1531_v46, 0.0  ;;  %s2085_s23 = scalar_lea.hbm %s2084_s19, 2  ;;  %p2090_p7 = scmp.lt.s32.totalorder %s2084_s19, %s3245_s8 }
 0x181   : > { %v1554_v0 = vadd.f32 %v1553_v8, %v1552_v23  ;;  %v1575_v14 = vmul.f32 %v1531_v46, %v1531_v46  ;;  %v1584_v63 = vsel %vm1533_vm10, %v1573_v57, 0.0  ;;  %v1561_v34 = vsel %vm1535_vm14, %v1532_v2, 0.0  ;;  %p2086_p4 = scmp.ne.s32.totalorder %s2084_s19, %s2085_s23  ;;  %p2091_p8 = scmp.lt.s32.totalorder %s2089_s11, %s2085_s23 }
 0x182   : > { %v1581_v26 = vadd.f32 %v1580_v30, %v1579_v51  ;;  %v1576_v39 = vmul.f32 %v1532_v2, %v1532_v2  ;;  %v1586_v44 = vsel %vm1535_vm14, %v1574_v40, 0.0  ;;  %vm1599_vm4 = vcmask 1040384   ;;  %v1598_v27 = vld [vmem:[%s3156_s16] sm:$0x3] }
 0x183   : > { %v1556_v50 = vadd.f32 %v1555_v29, %v1554_v0  ;;  %v1588_v16 = vsel %vm1533_vm10, %v1575_v14, 0.0  ;;  %p2087_p5 = pnand %p2086_p4, %p2260_p3  ;;  %p2092_p10 = por %p2091_p8, %p2090_p7 }
 0x184   : > { %v1583_v24 = vadd.f32 %v1582_v33, %v1581_v26  ;;  %v1590_v11 = vsel %vm1535_vm14, %v1576_v39, 0.0 }
 0x185   : > { %v1558_v41 = vadd.f32 %v1557_v56, %v1556_v50  ;;  %p2088_p6 = pneg %p2087_p5 }
 0x186   : > { %v1585_v19 = vadd.f32 %v1584_v63, %v1583_v24 }
 0x187   : > { %v1560_v58 = vadd.f32 %v1559_v59, %v1558_v41  ;;  %p2093_p11 = pnand %p2092_p10, %p2088_p6 }
 0x188   : > { %v1587_v3 = vadd.f32 %v1586_v44, %v1585_v19 }
 0x189   : > { %v1562_v20 = vadd.f32 %v1561_v34, %v1560_v58 }
 0x18a   : > { %v1589_v62 = vadd.f32 %v1588_v16, %v1587_v3 }
 0x18b   : > { %v1563_v45 = vrot.slane %v1562_v20, 4 }
 0x18c   : > { %v1591_v9 = vadd.f32 %v1590_v11, %v1589_v62 }
 0x18d   : > { %v1564_v52 = vadd.f32 %v1563_v45, %v1562_v20 }
 0x18e   : > { %v1592_v15 = vrot.slane %v1591_v9, 4 }
 0x18f   : > { %v1565_v55 = vrot.slane %v1564_v52, 2 }
 0x190   : > { %v1593_v35 = vadd.f32 %v1592_v15, %v1591_v9 }
 0x191   : > { %v1566_v54 = vadd.f32 %v1565_v55, %v1564_v52 }
 0x192   : > { %v1594_v22 = vrot.slane %v1593_v35, 2 }
 0x193   : > { %v1567_v36 = vrot.slane %v1566_v54, 1 }
 0x194   : > { %v1595_v53 = vadd.f32 %v1594_v22, %v1593_v35 }
 0x195   : > { %v1568_v17 = vadd.f32 %v1567_v36, %v1566_v54 }
 0x196   : > { %v1596_v18 = vrot.slane %v1595_v53, 1 }
 0x198   : > { %v1597_v32 = vadd.f32 %v1596_v18, %v1595_v53 }
 0x19a   : > { %v1600_v7 = vsel %vm1599_vm4, %v1568_v17, %v1597_v32 }
 0x19b   : > { %v1601_v38 = vadd.f32 %v1600_v7, %v1598_v27 }
 0x19d   : > { %1602 = vst.msk [vmem:[%s3156_s16] sm:$0x3] %vm1535_vm14, %v1601_v38 }
 0x19e   : > { %2096 = shalt.err (!%p2093_p11)
}
 0x19f   : > { %1942 = dma.vmem_to_hbm [thread:$0]  (%p2260_p3), %s1631_s21, 32, %s1633_s14, %s1614_s9  }
 0x1a0 PF: > { %p1948_p12 = scmp.ge.s32.totalorder %s2163_s12, 2  ;;  %s1657_s22 = sand.u32 1, %s2135_s27  }
 0x1a1   : > { %s1658_s29 = scalar_lea.sflag [#allocation3], %s1657_s22 }
 0x1a2   : > { %p1945_p13 = pnand %p1948_p12, %p2270_p9 }
 0x1a4   : > { %p1946_p0 = pneg %p1945_p13 }
 0x1a6   : > { %2130 = dma.done.wait (%p1946_p0), %s1658_s29, 32  }
 0x1a7   : > { %2132 = vsyncadd (%p1946_p0), %s1658_s29, 4294967264  ;;  %s22_s12 = sadd.s32 1, %s2163_s12   ;;  %s3398_s16 = sld [smem:[#allocation5_spill]] }
 0x1a8   : > { %p19_p1 = scmp.ge.s32.totalorder %s22_s12, 10   ;;  %s3399_s29 = sld [smem:[#allocation11_spill]] }
 0x1a9   : > { %s3400_s30 = sld [smem:[#allocation6_spill]]  ;;  %s3404_s27 = smov %s2139_s28 }
 0x1aa   : > { %s3401_s9 = sld [smem:[#allocation7_spill]]  ;;  %21 = sbr.rel (!%p19_p1) target bundleno = 5 (0x5), region = 119 }
 0x1ab   : > { %s3402_s10 = sld [smem:[#allocation8_spill]] }
 0x1ac   : > { %s3403_s11 = sld [smem:[#allocation9_spill]] }
 0x1ad   : > { %s3405_s28 = smov %s3398_s16 }
 0x1af   :  { %1664 = vsyncpa [#allocation3], 1 }
 0x1b0   :  { %1666 = vsyncpa [#allocation3 + $0x1], 1 }

</bundles_post_ra>
